<compile_context>
chip_gen: v6e
topology: v6e:2x2x1
jax: 0.10.0
libtpu: 0.0.40
codegen_flags: <defaults>
</compile_context>

<pallas_src>
import functools

import jax
import jax.numpy as jnp
from jax import lax
from jax.experimental import pallas as pl
from jax.experimental.pallas import tpu as pltpu


def _round_up(x, m):
    return ((x + m - 1) // m) * m


def _gru_last_kernel(x_ref, w_ih_ref, w_hh_ref, b_ih_ref, b_hh_ref,
                     out_ref, gi_ref, *, seq_len, batch_pad, hid_pad):
    """Single-invocation GRU: whole sequence resident in VMEM.

    x_ref:    (T*Bp, D)     time-major, batch-padded input slab
    w_ih_ref: (D,  3*Hp)    input->hidden weights, per-gate lane-padded (r,z,n)
    w_hh_ref: (Hp, 3*Hp)    hidden->hidden weights, per-gate lane-padded
    b_ih_ref: (1,  3*Hp)
    b_hh_ref: (1,  3*Hp)
    out_ref:  (Bp, Hp)      final hidden state
    gi_ref:   (T*Bp, 3*Hp)  VMEM scratch: precomputed input projections
    """
    T, Bp, Hp = seq_len, batch_pad, hid_pad

    # One batched MXU pass for the time-independent projection; b_ih folded in.
    gi_ref[...] = (
        jnp.dot(x_ref[...], w_ih_ref[...], preferred_element_type=jnp.float32)
        + b_ih_ref[...]
    )

    # Hoist the hidden-bias broadcast out of the serial loop (JAX does not CSE it).
    b_hh = jnp.broadcast_to(b_hh_ref[...], (Bp, 3 * Hp))

    def step(t, h_prev):
        row = pl.multiple_of(t * Bp, Bp)
        gi = gi_ref[pl.ds(row, Bp), :]                               # (Bp, 3*Hp)
        gh = jnp.dot(h_prev, w_hh_ref[...],
                     preferred_element_type=jnp.float32) + b_hh      # (Bp, 3*Hp)
        # Lane-aligned gate slices (each gate occupies Hp = 128 lanes).
        i_r, i_z, i_n = gi[:, :Hp], gi[:, Hp:2 * Hp], gi[:, 2 * Hp:]
        h_r, h_z, h_n = gh[:, :Hp], gh[:, Hp:2 * Hp], gh[:, 2 * Hp:]
        r = jax.nn.sigmoid(i_r + h_r)
        z = jax.nn.sigmoid(i_z + h_z)
        n = jnp.tanh(i_n + r * h_n)
        return n + z * (h_prev - n)                                  # == (1-z)*n + z*h

    h0 = jnp.zeros((Bp, Hp), jnp.float32)
    h_last = lax.fori_loop(0, T, step, h0, unroll=True)
    out_ref[...] = h_last.astype(out_ref.dtype)


def _per_gate_pad_weight(w, H, Hp, rows_pad):
    """PyTorch (3H, rows) weight -> (rows_pad, 3*Hp): transposed, each gate lane-padded."""
    rows = w.shape[1]
    gates = []
    for g in range(3):
        blk = jnp.transpose(w[g * H:(g + 1) * H, :], (1, 0))      # (rows, H)
        blk = jnp.pad(blk, ((0, rows_pad - rows), (0, Hp - H)))
        gates.append(blk)
    return jnp.concatenate(gates, axis=1)                         # (rows_pad, 3*Hp)


def _per_gate_pad_bias(b, H, Hp):
    gates = [jnp.pad(b[g * H:(g + 1) * H], (0, Hp - H)) for g in range(3)]
    return jnp.concatenate(gates).reshape(1, 3 * Hp)


def question_embedding_forward(x, w_ih, w_hh, b_ih, b_hh, num_hid):
    """Pallas implementation of QuestionEmbedding.forward (GRU, 1 layer, unidirectional).

    x:    (B, T, in_dim)  float32  (batch_first, like PyTorch)
    w_ih: (3H, in_dim), w_hh: (3H, H), b_ih/b_hh: (3H,)   -- PyTorch parameter shapes
    returns: (B, H) == output[:, -1]
    """
    B, T, D = x.shape
    H = num_hid
    Bp = _round_up(max(B, 1), 8)        # sublane-aligned batch
    Hp = _round_up(H, 128)              # lane-aligned per-gate width

    # --- wrapper glue (plain JAX): lane/sublane-aligned, pre-transposed layouts ---
    w_ih_p = _per_gate_pad_weight(w_ih, H, Hp, D)       # (D,  3*Hp)
    w_hh_p = _per_gate_pad_weight(w_hh, H, Hp, Hp)      # (Hp, 3*Hp)
    b_ih_p = _per_gate_pad_bias(b_ih, H, Hp)            # (1,  3*Hp)
    b_hh_p = _per_gate_pad_bias(b_hh, H, Hp)            # (1,  3*Hp)

    x_tm = jnp.transpose(x, (1, 0, 2))                  # (T, B, D) time-major
    x_tm = jnp.pad(x_tm, ((0, 0), (0, Bp - B), (0, 0)))
    x2d = x_tm.reshape(T * Bp, D)                       # (T*Bp, D) flat slab

    kernel = functools.partial(_gru_last_kernel,
                               seq_len=T, batch_pad=Bp, hid_pad=Hp)

    out_p = pl.pallas_call(
        kernel,
        out_shape=jax.ShapeDtypeStruct((Bp, Hp), x.dtype),
        grid_spec=pltpu.PrefetchScalarGridSpec(
            num_scalar_prefetch=0,
            grid=(1,),
            in_specs=[
                pl.BlockSpec((T * Bp, D), lambda i: (0, 0)),     # x (whole sequence)
                pl.BlockSpec((D, 3 * Hp), lambda i: (0, 0)),     # W_ih (resident)
                pl.BlockSpec((Hp, 3 * Hp), lambda i: (0, 0)),    # W_hh (resident)
                pl.BlockSpec((1, 3 * Hp), lambda i: (0, 0)),     # b_ih
                pl.BlockSpec((1, 3 * Hp), lambda i: (0, 0)),     # b_hh
            ],
            out_specs=pl.BlockSpec((Bp, Hp), lambda i: (0, 0)),
            scratch_shapes=[pltpu.VMEM((T * Bp, 3 * Hp), jnp.float32)],
        ),
        compiler_params=pltpu.CompilerParams(
            dimension_semantics=("arbitrary",),
        ),
    )(x2d, w_ih_p, w_hh_p, b_ih_p, b_hh_p)

    return out_p[:B, :H]


def _gru_reference(x, w_ih, w_hh, b_ih, b_hh, num_hid):
    """Pure-JAX reference (PyTorch GRU equations) for correctness check."""
    B, T, D = x.shape
    H = num_hid

    def step(h, x_t):
        gi = x_t @ w_ih.T + b_ih
        gh = h @ w_hh.T + b_hh
        i_r, i_z, i_n = gi[:, :H], gi[:, H:2 * H], gi[:, 2 * H:]
        h_r, h_z, h_n = gh[:, :H], gh[:, H:2 * H], gh[:, 2 * H:]
        r = jax.nn.sigmoid(i_r + h_r)
        z = jax.nn.sigmoid(i_z + h_z)
        n = jnp.tanh(i_n + r * h_n)
        h_new = (1.0 - z) * n + z * h
        return h_new, h_new

    h0 = jnp.zeros((B, H), jnp.float32)
    h_last, _ = lax.scan(step, h0, jnp.transpose(x, (1, 0, 2)))
    return h_last


if __name__ == "__main__":
    # Module config: QuestionEmbedding(in_dim=32, num_hid=32, nlayers=1,
    #                                  bidirect=False, dropout=0.0, rnn_type='GRU')
    B, T, in_dim, num_hid = 2, 8, 32, 32

    key = jax.random.PRNGKey(0)
    kx, k1, k2, k3, k4 = jax.random.split(key, 5)

    x = jax.random.normal(kx, (B, T, in_dim), dtype=jnp.float32)

    # Deterministic parameter init, PyTorch-style uniform(-1/sqrt(H), 1/sqrt(H)).
    bound = 1.0 / (num_hid ** 0.5)
    w_ih = jax.random.uniform(k1, (3 * num_hid, in_dim), jnp.float32, -bound, bound)
    w_hh = jax.random.uniform(k2, (3 * num_hid, num_hid), jnp.float32, -bound, bound)
    b_ih = jax.random.uniform(k3, (3 * num_hid,), jnp.float32, -bound, bound)
    b_hh = jax.random.uniform(k4, (3 * num_hid,), jnp.float32, -bound, bound)

    out = question_embedding_forward(x, w_ih, w_hh, b_ih, b_hh, num_hid)
    out = jax.block_until_ready(out)

    ref = _gru_reference(x, w_ih, w_hh, b_ih, b_hh, num_hid)
    assert out.shape == (B, num_hid)
    assert jnp.allclose(out, ref, atol=1e-5, rtol=1e-5), "Pallas GRU mismatch vs reference"

    print("KERNEL_OK")
</pallas_src>

<mosaic_0001>
module attributes {stable_mosaic.version = 11 : i64} {
  func.func @_gru_last_kernel(%arg0: i32, %arg1: memref<64x32xf32, #tpu.memory_space<vmem>>, %arg2: memref<32x384xf32, #tpu.memory_space<vmem>>, %arg3: memref<128x384xf32, #tpu.memory_space<vmem>>, %arg4: memref<1x384xf32, #tpu.memory_space<vmem>>, %arg5: memref<1x384xf32, #tpu.memory_space<vmem>>, %arg6: memref<8x128xf32, #tpu.memory_space<vmem>>, %arg7: memref<64x384xf32, #tpu.memory_space<vmem>>) attributes {dimension_semantics = [#tpu.dimension_semantics<arbitrary>], iteration_bounds = array<i64: 1>, scalar_prefetch = 0 : i64, scratch_operands = 1 : i64, tpu.core_type = #tpu.core_type<tc>, window_params = [{pipeline_mode = #tpu.pipeline_mode<synchronous>, transform_indices = @transform_0, window_bounds = array<i64: 64, 32>}, {pipeline_mode = #tpu.pipeline_mode<synchronous>, transform_indices = @transform_1, window_bounds = array<i64: 32, 384>}, {pipeline_mode = #tpu.pipeline_mode<synchronous>, transform_indices = @transform_2, window_bounds = array<i64: 128, 384>}, {pipeline_mode = #tpu.pipeline_mode<synchronous>, transform_indices = @transform_3, window_bounds = array<i64: 1, 384>}, {pipeline_mode = #tpu.pipeline_mode<synchronous>, transform_indices = @transform_4, window_bounds = array<i64: 1, 384>}, {pipeline_mode = #tpu.pipeline_mode<synchronous>, transform_indices = @transform_5, window_bounds = array<i64: 8, 128>}]} {
    %c0 = arith.constant 0 : index
    %c0_0 = arith.constant 0 : index
    %0 = vector.load %arg1[%c0, %c0_0] : memref<64x32xf32, #tpu.memory_space<vmem>>, vector<64x32xf32>
    %c0_1 = arith.constant 0 : index
    %c0_2 = arith.constant 0 : index
    %1 = vector.load %arg2[%c0_1, %c0_2] : memref<32x384xf32, #tpu.memory_space<vmem>>, vector<32x384xf32>
    %cst = arith.constant dense<0.000000e+00> : vector<64x384xf32>
    %2 = tpu.matmul %0, %1, %cst {dimension_numbers = #tpu.dot_dimension_numbers<[1], [0], [0], [1], [0, 0, 1, 1], [], []>} : vector<64x32xf32>, vector<32x384xf32>, vector<64x384xf32> -> vector<64x384xf32>
    %c0_3 = arith.constant 0 : index
    %c0_4 = arith.constant 0 : index
    %3 = vector.load %arg4[%c0_3, %c0_4] : memref<1x384xf32, #tpu.memory_space<vmem>>, vector<1x384xf32>
    %4 = vector.broadcast %3 : vector<1x384xf32> to vector<64x384xf32>
    %5 = arith.addf %2, %4 : vector<64x384xf32>
    %c0_5 = arith.constant 0 : index
    %c0_6 = arith.constant 0 : index
    %6 = vector.load %arg7[%c0_5, %c0_6] : memref<64x384xf32, #tpu.memory_space<vmem>>, vector<64x384xf32>
    tpu.vector_store %arg7[%c0_5, %c0_6], %5 {strides = array<i32>} : memref<64x384xf32, #tpu.memory_space<vmem>>, vector<64x384xf32>,
    %c0_7 = arith.constant 0 : index
    %c0_8 = arith.constant 0 : index
    %7 = vector.load %arg5[%c0_7, %c0_8] : memref<1x384xf32, #tpu.memory_space<vmem>>, vector<1x384xf32>
    %8 = vector.shape_cast %7 : vector<1x384xf32> to vector<1x384xf32>
    %9 = vector.broadcast %8 : vector<1x384xf32> to vector<8x384xf32>
    %cst_9 = arith.constant 0.000000e+00 : f32
    %10 = vector.broadcast %cst_9 : f32 to vector<8x128xf32>
    %c0_i32 = arith.constant 0 : i32
    %c8_i32 = arith.constant 8 : i32
    %11 = arith.muli %c0_i32, %c8_i32 : i32
    %12 = tpu.assume_multiple %11, 8 : i32
    %13 = arith.index_cast %12 : i32 to index
    %c0_10 = arith.constant 0 : index
    %14 = vector.load %arg7[%13, %c0_10] : memref<64x384xf32, #tpu.memory_space<vmem>>, vector<8x384xf32>
    %c0_11 = arith.constant 0 : index
    %c0_12 = arith.constant 0 : index
    %15 = vector.load %arg3[%c0_11, %c0_12] : memref<128x384xf32, #tpu.memory_space<vmem>>, vector<128x384xf32>
    %cst_13 = arith.constant dense<0.000000e+00> : vector<8x384xf32>
    %16 = tpu.matmul %10, %15, %cst_13 {dimension_numbers = #tpu.dot_dimension_numbers<[1], [0], [0], [1], [0, 0, 1, 1], [], []>} : vector<8x128xf32>, vector<128x384xf32>, vector<8x384xf32> -> vector<8x384xf32>
    %17 = arith.addf %16, %9 : vector<8x384xf32>
    %18 = vector.extract_strided_slice %14 {offsets = [0, 0], sizes = [8, 128], strides = [1, 1]} : vector<8x384xf32> to vector<8x128xf32>
    %19 = vector.extract_strided_slice %14 {offsets = [0, 128], sizes = [8, 128], strides = [1, 1]} : vector<8x384xf32> to vector<8x128xf32>
    %20 = vector.extract_strided_slice %14 {offsets = [0, 256], sizes = [8, 128], strides = [1, 1]} : vector<8x384xf32> to vector<8x128xf32>
    %21 = vector.extract_strided_slice %17 {offsets = [0, 0], sizes = [8, 128], strides = [1, 1]} : vector<8x384xf32> to vector<8x128xf32>
    %22 = vector.extract_strided_slice %17 {offsets = [0, 128], sizes = [8, 128], strides = [1, 1]} : vector<8x384xf32> to vector<8x128xf32>
    %23 = vector.extract_strided_slice %17 {offsets = [0, 256], sizes = [8, 128], strides = [1, 1]} : vector<8x384xf32> to vector<8x128xf32>
    %24 = arith.addf %18, %21 : vector<8x128xf32>
    %25 = arith.negf %24 : vector<8x128xf32>
    %26 = math.exp %25 : vector<8x128xf32>
    %cst_14 = arith.constant 1.000000e+00 : f32
    %27 = vector.broadcast %cst_14 : f32 to vector<8x128xf32>
    %28 = arith.addf %27, %26 : vector<8x128xf32>
    %29 = arith.divf %27, %28 : vector<8x128xf32>
    %30 = arith.addf %19, %22 : vector<8x128xf32>
    %31 = arith.negf %30 : vector<8x128xf32>
    %32 = math.exp %31 : vector<8x128xf32>
    %cst_15 = arith.constant 1.000000e+00 : f32
    %33 = vector.broadcast %cst_15 : f32 to vector<8x128xf32>
    %34 = arith.addf %33, %32 : vector<8x128xf32>
    %35 = arith.divf %33, %34 : vector<8x128xf32>
    %36 = arith.mulf %29, %23 : vector<8x128xf32>
    %37 = arith.addf %20, %36 : vector<8x128xf32>
    %38 = math.tanh %37 : vector<8x128xf32>
    %39 = arith.subf %10, %38 : vector<8x128xf32>
    %40 = arith.mulf %35, %39 : vector<8x128xf32>
    %41 = arith.addf %38, %40 : vector<8x128xf32>
    %c1_i32 = arith.constant 1 : i32
    %c8_i32_16 = arith.constant 8 : i32
    %42 = arith.muli %c1_i32, %c8_i32_16 : i32
    %43 = tpu.assume_multiple %42, 8 : i32
    %44 = arith.index_cast %43 : i32 to index
    %c0_17 = arith.constant 0 : index
    %45 = vector.load %arg7[%44, %c0_17] : memref<64x384xf32, #tpu.memory_space<vmem>>, vector<8x384xf32>
    %c0_18 = arith.constant 0 : index
    %c0_19 = arith.constant 0 : index
    %46 = vector.load %arg3[%c0_18, %c0_19] : memref<128x384xf32, #tpu.memory_space<vmem>>, vector<128x384xf32>
    %cst_20 = arith.constant dense<0.000000e+00> : vector<8x384xf32>
    %47 = tpu.matmul %41, %46, %cst_20 {dimension_numbers = #tpu.dot_dimension_numbers<[1], [0], [0], [1], [0, 0, 1, 1], [], []>} : vector<8x128xf32>, vector<128x384xf32>, vector<8x384xf32> -> vector<8x384xf32>
    %48 = arith.addf %47, %9 : vector<8x384xf32>
    %49 = vector.extract_strided_slice %45 {offsets = [0, 0], sizes = [8, 128], strides = [1, 1]} : vector<8x384xf32> to vector<8x128xf32>
    %50 = vector.extract_strided_slice %45 {offsets = [0, 128], sizes = [8, 128], strides = [1, 1]} : vector<8x384xf32> to vector<8x128xf32>
    %51 = vector.extract_strided_slice %45 {offsets = [0, 256], sizes = [8, 128], strides = [1, 1]} : vector<8x384xf32> to vector<8x128xf32>
    %52 = vector.extract_strided_slice %48 {offsets = [0, 0], sizes = [8, 128], strides = [1, 1]} : vector<8x384xf32> to vector<8x128xf32>
    %53 = vector.extract_strided_slice %48 {offsets = [0, 128], sizes = [8, 128], strides = [1, 1]} : vector<8x384xf32> to vector<8x128xf32>
    %54 = vector.extract_strided_slice %48 {offsets = [0, 256], sizes = [8, 128], strides = [1, 1]} : vector<8x384xf32> to vector<8x128xf32>
    %55 = arith.addf %49, %52 : vector<8x128xf32>
    %56 = arith.negf %55 : vector<8x128xf32>
    %57 = math.exp %56 : vector<8x128xf32>
    %cst_21 = arith.constant 1.000000e+00 : f32
    %58 = vector.broadcast %cst_21 : f32 to vector<8x128xf32>
    %59 = arith.addf %58, %57 : vector<8x128xf32>
    %60 = arith.divf %58, %59 : vector<8x128xf32>
    %61 = arith.addf %50, %53 : vector<8x128xf32>
    %62 = arith.negf %61 : vector<8x128xf32>
    %63 = math.exp %62 : vector<8x128xf32>
    %cst_22 = arith.constant 1.000000e+00 : f32
    %64 = vector.broadcast %cst_22 : f32 to vector<8x128xf32>
    %65 = arith.addf %64, %63 : vector<8x128xf32>
    %66 = arith.divf %64, %65 : vector<8x128xf32>
    %67 = arith.mulf %60, %54 : vector<8x128xf32>
    %68 = arith.addf %51, %67 : vector<8x128xf32>
    %69 = math.tanh %68 : vector<8x128xf32>
    %70 = arith.subf %41, %69 : vector<8x128xf32>
    %71 = arith.mulf %66, %70 : vector<8x128xf32>
    %72 = arith.addf %69, %71 : vector<8x128xf32>
    %c2_i32 = arith.constant 2 : i32
    %c8_i32_23 = arith.constant 8 : i32
    %73 = arith.muli %c2_i32, %c8_i32_23 : i32
    %74 = tpu.assume_multiple %73, 8 : i32
    %75 = arith.index_cast %74 : i32 to index
    %c0_24 = arith.constant 0 : index
    %76 = vector.load %arg7[%75, %c0_24] : memref<64x384xf32, #tpu.memory_space<vmem>>, vector<8x384xf32>
    %c0_25 = arith.constant 0 : index
    %c0_26 = arith.constant 0 : index
    %77 = vector.load %arg3[%c0_25, %c0_26] : memref<128x384xf32, #tpu.memory_space<vmem>>, vector<128x384xf32>
    %cst_27 = arith.constant dense<0.000000e+00> : vector<8x384xf32>
    %78 = tpu.matmul %72, %77, %cst_27 {dimension_numbers = #tpu.dot_dimension_numbers<[1], [0], [0], [1], [0, 0, 1, 1], [], []>} : vector<8x128xf32>, vector<128x384xf32>, vector<8x384xf32> -> vector<8x384xf32>
    %79 = arith.addf %78, %9 : vector<8x384xf32>
    %80 = vector.extract_strided_slice %76 {offsets = [0, 0], sizes = [8, 128], strides = [1, 1]} : vector<8x384xf32> to vector<8x128xf32>
    %81 = vector.extract_strided_slice %76 {offsets = [0, 128], sizes = [8, 128], strides = [1, 1]} : vector<8x384xf32> to vector<8x128xf32>
    %82 = vector.extract_strided_slice %76 {offsets = [0, 256], sizes = [8, 128], strides = [1, 1]} : vector<8x384xf32> to vector<8x128xf32>
    %83 = vector.extract_strided_slice %79 {offsets = [0, 0], sizes = [8, 128], strides = [1, 1]} : vector<8x384xf32> to vector<8x128xf32>
    %84 = vector.extract_strided_slice %79 {offsets = [0, 128], sizes = [8, 128], strides = [1, 1]} : vector<8x384xf32> to vector<8x128xf32>
    %85 = vector.extract_strided_slice %79 {offsets = [0, 256], sizes = [8, 128], strides = [1, 1]} : vector<8x384xf32> to vector<8x128xf32>
    %86 = arith.addf %80, %83 : vector<8x128xf32>
    %87 = arith.negf %86 : vector<8x128xf32>
    %88 = math.exp %87 : vector<8x128xf32>
    %cst_28 = arith.constant 1.000000e+00 : f32
    %89 = vector.broadcast %cst_28 : f32 to vector<8x128xf32>
    %90 = arith.addf %89, %88 : vector<8x128xf32>
    %91 = arith.divf %89, %90 : vector<8x128xf32>
    %92 = arith.addf %81, %84 : vector<8x128xf32>
    %93 = arith.negf %92 : vector<8x128xf32>
    %94 = math.exp %93 : vector<8x128xf32>
    %cst_29 = arith.constant 1.000000e+00 : f32
    %95 = vector.broadcast %cst_29 : f32 to vector<8x128xf32>
    %96 = arith.addf %95, %94 : vector<8x128xf32>
    %97 = arith.divf %95, %96 : vector<8x128xf32>
    %98 = arith.mulf %91, %85 : vector<8x128xf32>
    %99 = arith.addf %82, %98 : vector<8x128xf32>
    %100 = math.tanh %99 : vector<8x128xf32>
    %101 = arith.subf %72, %100 : vector<8x128xf32>
    %102 = arith.mulf %97, %101 : vector<8x128xf32>
    %103 = arith.addf %100, %102 : vector<8x128xf32>
    %c3_i32 = arith.constant 3 : i32
    %c8_i32_30 = arith.constant 8 : i32
    %104 = arith.muli %c3_i32, %c8_i32_30 : i32
    %105 = tpu.assume_multiple %104, 8 : i32
    %106 = arith.index_cast %105 : i32 to index
    %c0_31 = arith.constant 0 : index
    %107 = vector.load %arg7[%106, %c0_31] : memref<64x384xf32, #tpu.memory_space<vmem>>, vector<8x384xf32>
    %c0_32 = arith.constant 0 : index
    %c0_33 = arith.constant 0 : index
    %108 = vector.load %arg3[%c0_32, %c0_33] : memref<128x384xf32, #tpu.memory_space<vmem>>, vector<128x384xf32>
    %cst_34 = arith.constant dense<0.000000e+00> : vector<8x384xf32>
    %109 = tpu.matmul %103, %108, %cst_34 {dimension_numbers = #tpu.dot_dimension_numbers<[1], [0], [0], [1], [0, 0, 1, 1], [], []>} : vector<8x128xf32>, vector<128x384xf32>, vector<8x384xf32> -> vector<8x384xf32>
    %110 = arith.addf %109, %9 : vector<8x384xf32>
    %111 = vector.extract_strided_slice %107 {offsets = [0, 0], sizes = [8, 128], strides = [1, 1]} : vector<8x384xf32> to vector<8x128xf32>
    %112 = vector.extract_strided_slice %107 {offsets = [0, 128], sizes = [8, 128], strides = [1, 1]} : vector<8x384xf32> to vector<8x128xf32>
    %113 = vector.extract_strided_slice %107 {offsets = [0, 256], sizes = [8, 128], strides = [1, 1]} : vector<8x384xf32> to vector<8x128xf32>
    %114 = vector.extract_strided_slice %110 {offsets = [0, 0], sizes = [8, 128], strides = [1, 1]} : vector<8x384xf32> to vector<8x128xf32>
    %115 = vector.extract_strided_slice %110 {offsets = [0, 128], sizes = [8, 128], strides = [1, 1]} : vector<8x384xf32> to vector<8x128xf32>
    %116 = vector.extract_strided_slice %110 {offsets = [0, 256], sizes = [8, 128], strides = [1, 1]} : vector<8x384xf32> to vector<8x128xf32>
    %117 = arith.addf %111, %114 : vector<8x128xf32>
    %118 = arith.negf %117 : vector<8x128xf32>
    %119 = math.exp %118 : vector<8x128xf32>
    %cst_35 = arith.constant 1.000000e+00 : f32
    %120 = vector.broadcast %cst_35 : f32 to vector<8x128xf32>
    %121 = arith.addf %120, %119 : vector<8x128xf32>
    %122 = arith.divf %120, %121 : vector<8x128xf32>
    %123 = arith.addf %112, %115 : vector<8x128xf32>
    %124 = arith.negf %123 : vector<8x128xf32>
    %125 = math.exp %124 : vector<8x128xf32>
    %cst_36 = arith.constant 1.000000e+00 : f32
    %126 = vector.broadcast %cst_36 : f32 to vector<8x128xf32>
    %127 = arith.addf %126, %125 : vector<8x128xf32>
    %128 = arith.divf %126, %127 : vector<8x128xf32>
    %129 = arith.mulf %122, %116 : vector<8x128xf32>
    %130 = arith.addf %113, %129 : vector<8x128xf32>
    %131 = math.tanh %130 : vector<8x128xf32>
    %132 = arith.subf %103, %131 : vector<8x128xf32>
    %133 = arith.mulf %128, %132 : vector<8x128xf32>
    %134 = arith.addf %131, %133 : vector<8x128xf32>
    %c4_i32 = arith.constant 4 : i32
    %c8_i32_37 = arith.constant 8 : i32
    %135 = arith.muli %c4_i32, %c8_i32_37 : i32
    %136 = tpu.assume_multiple %135, 8 : i32
    %137 = arith.index_cast %136 : i32 to index
    %c0_38 = arith.constant 0 : index
    %138 = vector.load %arg7[%137, %c0_38] : memref<64x384xf32, #tpu.memory_space<vmem>>, vector<8x384xf32>
    %c0_39 = arith.constant 0 : index
    %c0_40 = arith.constant 0 : index
    %139 = vector.load %arg3[%c0_39, %c0_40] : memref<128x384xf32, #tpu.memory_space<vmem>>, vector<128x384xf32>
    %cst_41 = arith.constant dense<0.000000e+00> : vector<8x384xf32>
    %140 = tpu.matmul %134, %139, %cst_41 {dimension_numbers = #tpu.dot_dimension_numbers<[1], [0], [0], [1], [0, 0, 1, 1], [], []>} : vector<8x128xf32>, vector<128x384xf32>, vector<8x384xf32> -> vector<8x384xf32>
    %141 = arith.addf %140, %9 : vector<8x384xf32>
    %142 = vector.extract_strided_slice %138 {offsets = [0, 0], sizes = [8, 128], strides = [1, 1]} : vector<8x384xf32> to vector<8x128xf32>
    %143 = vector.extract_strided_slice %138 {offsets = [0, 128], sizes = [8, 128], strides = [1, 1]} : vector<8x384xf32> to vector<8x128xf32>
    %144 = vector.extract_strided_slice %138 {offsets = [0, 256], sizes = [8, 128], strides = [1, 1]} : vector<8x384xf32> to vector<8x128xf32>
    %145 = vector.extract_strided_slice %141 {offsets = [0, 0], sizes = [8, 128], strides = [1, 1]} : vector<8x384xf32> to vector<8x128xf32>
    %146 = vector.extract_strided_slice %141 {offsets = [0, 128], sizes = [8, 128], strides = [1, 1]} : vector<8x384xf32> to vector<8x128xf32>
    %147 = vector.extract_strided_slice %141 {offsets = [0, 256], sizes = [8, 128], strides = [1, 1]} : vector<8x384xf32> to vector<8x128xf32>
    %148 = arith.addf %142, %145 : vector<8x128xf32>
    %149 = arith.negf %148 : vector<8x128xf32>
    %150 = math.exp %149 : vector<8x128xf32>
    %cst_42 = arith.constant 1.000000e+00 : f32
    %151 = vector.broadcast %cst_42 : f32 to vector<8x128xf32>
    %152 = arith.addf %151, %150 : vector<8x128xf32>
    %153 = arith.divf %151, %152 : vector<8x128xf32>
    %154 = arith.addf %143, %146 : vector<8x128xf32>
    %155 = arith.negf %154 : vector<8x128xf32>
    %156 = math.exp %155 : vector<8x128xf32>
    %cst_43 = arith.constant 1.000000e+00 : f32
    %157 = vector.broadcast %cst_43 : f32 to vector<8x128xf32>
    %158 = arith.addf %157, %156 : vector<8x128xf32>
    %159 = arith.divf %157, %158 : vector<8x128xf32>
    %160 = arith.mulf %153, %147 : vector<8x128xf32>
    %161 = arith.addf %144, %160 : vector<8x128xf32>
    %162 = math.tanh %161 : vector<8x128xf32>
    %163 = arith.subf %134, %162 : vector<8x128xf32>
    %164 = arith.mulf %159, %163 : vector<8x128xf32>
    %165 = arith.addf %162, %164 : vector<8x128xf32>
    %c5_i32 = arith.constant 5 : i32
    %c8_i32_44 = arith.constant 8 : i32
    %166 = arith.muli %c5_i32, %c8_i32_44 : i32
    %167 = tpu.assume_multiple %166, 8 : i32
    %168 = arith.index_cast %167 : i32 to index
    %c0_45 = arith.constant 0 : index
    %169 = vector.load %arg7[%168, %c0_45] : memref<64x384xf32, #tpu.memory_space<vmem>>, vector<8x384xf32>
    %c0_46 = arith.constant 0 : index
    %c0_47 = arith.constant 0 : index
    %170 = vector.load %arg3[%c0_46, %c0_47] : memref<128x384xf32, #tpu.memory_space<vmem>>, vector<128x384xf32>
    %cst_48 = arith.constant dense<0.000000e+00> : vector<8x384xf32>
    %171 = tpu.matmul %165, %170, %cst_48 {dimension_numbers = #tpu.dot_dimension_numbers<[1], [0], [0], [1], [0, 0, 1, 1], [], []>} : vector<8x128xf32>, vector<128x384xf32>, vector<8x384xf32> -> vector<8x384xf32>
    %172 = arith.addf %171, %9 : vector<8x384xf32>
    %173 = vector.extract_strided_slice %169 {offsets = [0, 0], sizes = [8, 128], strides = [1, 1]} : vector<8x384xf32> to vector<8x128xf32>
    %174 = vector.extract_strided_slice %169 {offsets = [0, 128], sizes = [8, 128], strides = [1, 1]} : vector<8x384xf32> to vector<8x128xf32>
    %175 = vector.extract_strided_slice %169 {offsets = [0, 256], sizes = [8, 128], strides = [1, 1]} : vector<8x384xf32> to vector<8x128xf32>
    %176 = vector.extract_strided_slice %172 {offsets = [0, 0], sizes = [8, 128], strides = [1, 1]} : vector<8x384xf32> to vector<8x128xf32>
    %177 = vector.extract_strided_slice %172 {offsets = [0, 128], sizes = [8, 128], strides = [1, 1]} : vector<8x384xf32> to vector<8x128xf32>
    %178 = vector.extract_strided_slice %172 {offsets = [0, 256], sizes = [8, 128], strides = [1, 1]} : vector<8x384xf32> to vector<8x128xf32>
    %179 = arith.addf %173, %176 : vector<8x128xf32>
    %180 = arith.negf %179 : vector<8x128xf32>
    %181 = math.exp %180 : vector<8x128xf32>
    %cst_49 = arith.constant 1.000000e+00 : f32
    %182 = vector.broadcast %cst_49 : f32 to vector<8x128xf32>
    %183 = arith.addf %182, %181 : vector<8x128xf32>
    %184 = arith.divf %182, %183 : vector<8x128xf32>
    %185 = arith.addf %174, %177 : vector<8x128xf32>
    %186 = arith.negf %185 : vector<8x128xf32>
    %187 = math.exp %186 : vector<8x128xf32>
    %cst_50 = arith.constant 1.000000e+00 : f32
    %188 = vector.broadcast %cst_50 : f32 to vector<8x128xf32>
    %189 = arith.addf %188, %187 : vector<8x128xf32>
    %190 = arith.divf %188, %189 : vector<8x128xf32>
    %191 = arith.mulf %184, %178 : vector<8x128xf32>
    %192 = arith.addf %175, %191 : vector<8x128xf32>
    %193 = math.tanh %192 : vector<8x128xf32>
    %194 = arith.subf %165, %193 : vector<8x128xf32>
    %195 = arith.mulf %190, %194 : vector<8x128xf32>
    %196 = arith.addf %193, %195 : vector<8x128xf32>
    %c6_i32 = arith.constant 6 : i32
    %c8_i32_51 = arith.constant 8 : i32
    %197 = arith.muli %c6_i32, %c8_i32_51 : i32
    %198 = tpu.assume_multiple %197, 8 : i32
    %199 = arith.index_cast %198 : i32 to index
    %c0_52 = arith.constant 0 : index
    %200 = vector.load %arg7[%199, %c0_52] : memref<64x384xf32, #tpu.memory_space<vmem>>, vector<8x384xf32>
    %c0_53 = arith.constant 0 : index
    %c0_54 = arith.constant 0 : index
    %201 = vector.load %arg3[%c0_53, %c0_54] : memref<128x384xf32, #tpu.memory_space<vmem>>, vector<128x384xf32>
    %cst_55 = arith.constant dense<0.000000e+00> : vector<8x384xf32>
    %202 = tpu.matmul %196, %201, %cst_55 {dimension_numbers = #tpu.dot_dimension_numbers<[1], [0], [0], [1], [0, 0, 1, 1], [], []>} : vector<8x128xf32>, vector<128x384xf32>, vector<8x384xf32> -> vector<8x384xf32>
    %203 = arith.addf %202, %9 : vector<8x384xf32>
    %204 = vector.extract_strided_slice %200 {offsets = [0, 0], sizes = [8, 128], strides = [1, 1]} : vector<8x384xf32> to vector<8x128xf32>
    %205 = vector.extract_strided_slice %200 {offsets = [0, 128], sizes = [8, 128], strides = [1, 1]} : vector<8x384xf32> to vector<8x128xf32>
    %206 = vector.extract_strided_slice %200 {offsets = [0, 256], sizes = [8, 128], strides = [1, 1]} : vector<8x384xf32> to vector<8x128xf32>
    %207 = vector.extract_strided_slice %203 {offsets = [0, 0], sizes = [8, 128], strides = [1, 1]} : vector<8x384xf32> to vector<8x128xf32>
    %208 = vector.extract_strided_slice %203 {offsets = [0, 128], sizes = [8, 128], strides = [1, 1]} : vector<8x384xf32> to vector<8x128xf32>
    %209 = vector.extract_strided_slice %203 {offsets = [0, 256], sizes = [8, 128], strides = [1, 1]} : vector<8x384xf32> to vector<8x128xf32>
    %210 = arith.addf %204, %207 : vector<8x128xf32>
    %211 = arith.negf %210 : vector<8x128xf32>
    %212 = math.exp %211 : vector<8x128xf32>
    %cst_56 = arith.constant 1.000000e+00 : f32
    %213 = vector.broadcast %cst_56 : f32 to vector<8x128xf32>
    %214 = arith.addf %213, %212 : vector<8x128xf32>
    %215 = arith.divf %213, %214 : vector<8x128xf32>
    %216 = arith.addf %205, %208 : vector<8x128xf32>
    %217 = arith.negf %216 : vector<8x128xf32>
    %218 = math.exp %217 : vector<8x128xf32>
    %cst_57 = arith.constant 1.000000e+00 : f32
    %219 = vector.broadcast %cst_57 : f32 to vector<8x128xf32>
    %220 = arith.addf %219, %218 : vector<8x128xf32>
    %221 = arith.divf %219, %220 : vector<8x128xf32>
    %222 = arith.mulf %215, %209 : vector<8x128xf32>
    %223 = arith.addf %206, %222 : vector<8x128xf32>
    %224 = math.tanh %223 : vector<8x128xf32>
    %225 = arith.subf %196, %224 : vector<8x128xf32>
    %226 = arith.mulf %221, %225 : vector<8x128xf32>
    %227 = arith.addf %224, %226 : vector<8x128xf32>
    %c7_i32 = arith.constant 7 : i32
    %c8_i32_58 = arith.constant 8 : i32
    %228 = arith.muli %c7_i32, %c8_i32_58 : i32
    %229 = tpu.assume_multiple %228, 8 : i32
    %230 = arith.index_cast %229 : i32 to index
    %c0_59 = arith.constant 0 : index
    %231 = vector.load %arg7[%230, %c0_59] : memref<64x384xf32, #tpu.memory_space<vmem>>, vector<8x384xf32>
    %c0_60 = arith.constant 0 : index
    %c0_61 = arith.constant 0 : index
    %232 = vector.load %arg3[%c0_60, %c0_61] : memref<128x384xf32, #tpu.memory_space<vmem>>, vector<128x384xf32>
    %cst_62 = arith.constant dense<0.000000e+00> : vector<8x384xf32>
    %233 = tpu.matmul %227, %232, %cst_62 {dimension_numbers = #tpu.dot_dimension_numbers<[1], [0], [0], [1], [0, 0, 1, 1], [], []>} : vector<8x128xf32>, vector<128x384xf32>, vector<8x384xf32> -> vector<8x384xf32>
    %234 = arith.addf %233, %9 : vector<8x384xf32>
    %235 = vector.extract_strided_slice %231 {offsets = [0, 0], sizes = [8, 128], strides = [1, 1]} : vector<8x384xf32> to vector<8x128xf32>
    %236 = vector.extract_strided_slice %231 {offsets = [0, 128], sizes = [8, 128], strides = [1, 1]} : vector<8x384xf32> to vector<8x128xf32>
    %237 = vector.extract_strided_slice %231 {offsets = [0, 256], sizes = [8, 128], strides = [1, 1]} : vector<8x384xf32> to vector<8x128xf32>
    %238 = vector.extract_strided_slice %234 {offsets = [0, 0], sizes = [8, 128], strides = [1, 1]} : vector<8x384xf32> to vector<8x128xf32>
    %239 = vector.extract_strided_slice %234 {offsets = [0, 128], sizes = [8, 128], strides = [1, 1]} : vector<8x384xf32> to vector<8x128xf32>
    %240 = vector.extract_strided_slice %234 {offsets = [0, 256], sizes = [8, 128], strides = [1, 1]} : vector<8x384xf32> to vector<8x128xf32>
    %241 = arith.addf %235, %238 : vector<8x128xf32>
    %242 = arith.negf %241 : vector<8x128xf32>
    %243 = math.exp %242 : vector<8x128xf32>
    %cst_63 = arith.constant 1.000000e+00 : f32
    %244 = vector.broadcast %cst_63 : f32 to vector<8x128xf32>
    %245 = arith.addf %244, %243 : vector<8x128xf32>
    %246 = arith.divf %244, %245 : vector<8x128xf32>
    %247 = arith.addf %236, %239 : vector<8x128xf32>
    %248 = arith.negf %247 : vector<8x128xf32>
    %249 = math.exp %248 : vector<8x128xf32>
    %cst_64 = arith.constant 1.000000e+00 : f32
    %250 = vector.broadcast %cst_64 : f32 to vector<8x128xf32>
    %251 = arith.addf %250, %249 : vector<8x128xf32>
    %252 = arith.divf %250, %251 : vector<8x128xf32>
    %253 = arith.mulf %246, %240 : vector<8x128xf32>
    %254 = arith.addf %237, %253 : vector<8x128xf32>
    %255 = math.tanh %254 : vector<8x128xf32>
    %256 = arith.subf %227, %255 : vector<8x128xf32>
    %257 = arith.mulf %252, %256 : vector<8x128xf32>
    %258 = arith.addf %255, %257 : vector<8x128xf32>
    %c8_i32_65 = arith.constant 8 : i32
    %c0_66 = arith.constant 0 : index
    %c0_67 = arith.constant 0 : index
    %259 = vector.load %arg6[%c0_66, %c0_67] : memref<8x128xf32, #tpu.memory_space<vmem>>, vector<8x128xf32>
    tpu.vector_store %arg6[%c0_66, %c0_67], %258 {strides = array<i32>} : memref<8x128xf32, #tpu.memory_space<vmem>>, vector<8x128xf32>,
    return
  }
  func.func @transform_0(%arg0: i32) -> (i32, i32) {
    %c0_i32 = arith.constant 0 : i32
    %c0_i32_0 = arith.constant 0 : i32
    %c0_i32_1 = arith.constant 0 : i32
    return %c0_i32, %c0_i32_0 : i32, i32
  }
  func.func @transform_1(%arg0: i32) -> (i32, i32) {
    %c0_i32 = arith.constant 0 : i32
    %c0_i32_0 = arith.constant 0 : i32
    %c0_i32_1 = arith.constant 0 : i32
    return %c0_i32, %c0_i32_0 : i32, i32
  }
  func.func @transform_2(%arg0: i32) -> (i32, i32) {
    %c0_i32 = arith.constant 0 : i32
    %c0_i32_0 = arith.constant 0 : i32
    %c0_i32_1 = arith.constant 0 : i32
    return %c0_i32, %c0_i32_0 : i32, i32
  }
  func.func @transform_3(%arg0: i32) -> (i32, i32) {
    %c0_i32 = arith.constant 0 : i32
    %c0_i32_0 = arith.constant 0 : i32
    %c0_i32_1 = arith.constant 0 : i32
    return %c0_i32, %c0_i32_0 : i32, i32
  }
  func.func @transform_4(%arg0: i32) -> (i32, i32) {
    %c0_i32 = arith.constant 0 : i32
    %c0_i32_0 = arith.constant 0 : i32
    %c0_i32_1 = arith.constant 0 : i32
    return %c0_i32, %c0_i32_0 : i32, i32
  }
  func.func @transform_5(%arg0: i32) -> (i32, i32) {
    %c0_i32 = arith.constant 0 : i32
    %c0_i32_0 = arith.constant 0 : i32
    %c0_i32_1 = arith.constant 0 : i32
    return %c0_i32, %c0_i32_0 : i32, i32
  }
}

</mosaic_0001>

<bundles_post_ra>
// kernel: tpu_custom_call.1
= control target key start
LH: loop header
LB: loop body
LE: loop exit
PB: predicated region body
PF: predicated region fallthrough
CT: control target
= control target key end

     0   :  { %10 = vsyncpa [#allocation4], 0  ;;  %s3431_s0 = inlined_call_operand.vmem [shape: f32[64,32], index: 0, kind: input, shape index: {}]   ;;  %s3432_s1 = inlined_call_operand.vmem [shape: f32[32,384], index: 1, kind: input, shape index: {}]   ;;  %s3433_s2 = inlined_call_operand.hbm [shape: f32[128,384], index: 2, kind: input, shape index: {}]   ;;  %s3434_s3 = inlined_call_operand.vmem [shape: f32[1,384], index: 3, kind: input, shape index: {}]   ;;  %s3435_s4 = inlined_call_operand.vmem [shape: f32[1,384], index: 4, kind: input, shape index: {}]   ;;  %s3436_s5 = inlined_call_operand.hbm [shape: f32[8,128], index: 5, kind: output, shape index: {}]  }
   0x1   :  { %11 = vsyncpa [#allocation5], 0  ;;  %s2421_s18 = smov [#allocation3]  }
   0x2   :  { %s21_s19 = sshll.u32 %s2421_s18, 4  ;;  %s22_s19 = int_to_ptr.vmem [resolvable:$true] %s21_s19 }
   0x3   :  { %s2385_s20 = scalar_lea.vmem %s22_s19, 6144  ;;  %p2390_p1 = scmp.lt.s32.totalorder %s22_s19, %s22_s19 }
   0x4   :  { %p2386_p0 = scmp.ne.s32.totalorder %s22_s19, %s2385_s20  ;;  %p2391_p2 = scmp.lt.s32.totalorder %s2385_s20, %s2385_s20 }
   0x6   :  { %p2392_p3 = por %p2391_p2, %p2390_p1 }
   0x8   :  { %p2393_p4 = pnand %p2392_p3, %p2386_p0 }
   0xa   :  { %2396 = shalt.err (!%p2393_p4)
}
   0xb   :  { %s2422_s21 = smov 384   ;;  %s2423_s22 = smov 24  }
   0xc   :  { %27 = dma.hbm_to_vmem [thread:$0]  %s3433_s2, 6144, %s22_s19, [#allocation4], %s2422_s21, %s2422_s21, %s2423_s22  }
   0xd   :  { %2417 = dma.done.wait [#allocation4], 6144  }
   0xe   :  { %2418 = vsyncadd [#allocation4], 4294961152  ;;  %v3437_v0 = vmov 0.0   ;;  %v53_v1 = vld [vmem:[%s3432_s1 + $0x50] sm:$0xff]  ;;  %v52_v2 = vld [vmem:[%s3432_s1 + $0x48] sm:$0xff]  ;;  %vm72_vm0 = vcmask 261120  }
   0xf   :  { %161 = vmatprep.mubr.f32.mxu0 %v3437_v0  ;;  %v50_v3 = vld [vmem:[%s3432_s1 + $0x38] sm:$0xff]  ;;  %121 = vmatprep.subr.mxu0 %v53_v1  ;;  %v49_v4 = vld [vmem:[%s3432_s1 + $0x30] sm:$0xff]  ;;  %v47_v5 = vld [vmem:[%s3432_s1 + $0x20] sm:$0xff]  ;;  %vm2425_vm1 = vmmov 0  }
  0x10   :  { %122 = vmatpush1.msra.mxu0 %v52_v2  ;;  %v35_v6 = vld [vmem:[%s3431_s0] sm:$0xff]  ;;  %v46_v7 = vld [vmem:[%s3432_s1 + $0x18] sm:$0xff]  ;;  %v44_v8 = vld [vmem:[%s3432_s1 + $0x8] sm:$0xff] }
  0x11   :  { %123 = vmatprep.subr.mxu0 %v50_v3  ;;  %1951 = vmatprep.mubr.msk.f32.mxu1 %vm72_vm0, %v35_v6  ;;  %v43_v9 = vld [vmem:[%s3432_s1] sm:$0xff]  ;;  %v2489_v10 = vld [vmem:[#allocation3 + $0x170] sm:$0xff]  ;;  %v2491_v11 = vld [vmem:[#allocation3 + $0x168] sm:$0xff] }
  0x12   :  { %124 = vmatpush1.msra.mxu0 %v49_v4  ;;  %3463 = vst [vmem:[#allocation9_spill] sm:$0xff] %v2489_v10  ;;  %v2493_v12 = vld [vmem:[#allocation3 + $0x158] sm:$0xff]  ;;  %v2497_v13 = vld [vmem:[#allocation3 + $0x150] sm:$0xff]  ;;  %v2504_v14 = vld [vmem:[%s3431_s0 + $0x8] sm:$0xff] }
  0x13   :  { %125 = vmatprep.subr.mxu0 %v47_v5  ;;  %v2506_v15 = vld [vmem:[#allocation3 + $0x140] sm:$0xff]  ;;  %v2509_v16 = vld [vmem:[#allocation3 + $0x138] sm:$0xff]  ;;  %v2512_v17 = vld [vmem:[#allocation3 + $0x128] sm:$0xff] }
  0x14   :  { %126 = vmatpush1.msra.mxu0 %v46_v7  ;;  %v2517_v18 = vld [vmem:[#allocation3 + $0x120] sm:$0xff]  ;;  %v54_v19 = vld [vmem:[%s3432_s1 + $0x58] sm:$0xff]  ;;  %v2527_v20 = vld [vmem:[%s3431_s0 + $0x10] sm:$0xff] }
  0x15   :  { %127 = vmatprep.subr.mxu0 %v44_v8  ;;  %v2529_v21 = vld [vmem:[#allocation3 + $0x110] sm:$0xff]  ;;  %v2532_v22 = vld [vmem:[#allocation3 + $0x108] sm:$0xff]  ;;  %1943 = vmatprep.subr.mxu1 %v54_v19  ;;  %v2535_v23 = vld [vmem:[#allocation3 + $0xf8] sm:$0xff] }
  0x16   :  { %128 = vmatpush1.msra.mxu0 %v43_v9  ;;  %1944 = vmatpush3.msra.mxu1 %v54_v19  ;;  %v51_v24 = vld [vmem:[%s3432_s1 + $0x40] sm:$0xff]  ;;  %v2543_v25 = vld [vmem:[#allocation3 + $0xf0] sm:$0xff]  ;;  %v2550_v26 = vld [vmem:[%s3431_s0 + $0x18] sm:$0xff] }
  0x17   :  { %1763 = vmatmul.mubr.msk.f32.vlgmr.msra.gmra.mxu0 %vm72_vm0, %v35_v6  ;;  %410 = vmatprep.subr.mxu0 %v2489_v10  ;;  %v2552_v27 = vld [vmem:[#allocation3 + $0xe0] sm:$0xff]  ;;  %v2555_v28 = vld [vmem:[#allocation3 + $0xd8] sm:$0xff]  ;;  %v2558_v29 = vld [vmem:[#allocation3 + $0xc8] sm:$0xff]  ;;  %v57_v6 = vlaneseq }
  0x18   :  { %411 = vmatpush1.msra.mxu0 %v2491_v11  ;;  %167 = vmatprep.mubr.f32.mxu0 %v3437_v0  ;;  %v48_v30 = vld [vmem:[%s3432_s1 + $0x28] sm:$0xff]  ;;  %v2566_v31 = vld [vmem:[#allocation3 + $0xc0] sm:$0xff]  ;;  %v2575_v33 = vld [vmem:[#allocation3 + $0xb0] sm:$0xff] }
  0x19   :  { %412 = vmatprep.subr.mxu0 %v2493_v12  ;;  %1945 = vmatprep.subr.mxu1 %v51_v24  ;;  %v2573_v32 = vld [vmem:[%s3431_s0 + $0x20] sm:$0xff]  ;;  %v2578_v34 = vld [vmem:[#allocation3 + $0xa8] sm:$0xff]  ;;  %v2581_v35 = vld [vmem:[#allocation3 + $0x98] sm:$0xff]  ;;  %v2798_v7 = vshrl.u32 %v57_v6, 7 }
  0x1a   :  { %413 = vmatpush1.msra.mxu0 %v2497_v13  ;;  %1946 = vmatpush3.msra.mxu1 %v51_v24  ;;  %v45_v36 = vld [vmem:[%s3432_s1 + $0x10] sm:$0xff]  ;;  %v2596_v38 = vld [vmem:[%s3431_s0 + $0x28] sm:$0xff]  ;;  %v2598_v39 = vld [vmem:[#allocation3 + $0x80] sm:$0xff] }
  0x1b   :  { %1764 = vmatmul.mubr.msk.f32.gmra.mxu0 %vm72_vm0, %v2504_v14  ;;  %414 = vmatprep.subr.mxu0 %v2506_v15  ;;  %v2589_v37 = vld [vmem:[#allocation3 + $0x90] sm:$0xff]  ;;  %v2601_v40 = vld [vmem:[#allocation3 + $0x78] sm:$0xff]  ;;  %v2604_v41 = vld [vmem:[#allocation3 + $0x68] sm:$0xff]  ;;  %v59_v8 = vsub.s32 0, %v2798_v7  ;;  %v63_v19 = vsub.s32 1, %v2798_v7 }
  0x1c   :  { %415 = vmatpush1.msra.mxu0 %v2509_v16  ;;  %173 = vmatprep.mubr.f32.mxu0 %v3437_v0  ;;  %v2609_v42 = vld [vmem:[#allocation3 + $0x60] sm:$0xff]  ;;  %v41_v43 = vld [vmem:[%s3431_s0 + $0x30] sm:$0xff]  ;;  %v2619_v45 = vld [vmem:[#allocation3 + $0x48] sm:$0xff] }
  0x1d   :  { %416 = vmatprep.subr.mxu0 %v2512_v17  ;;  %1947 = vmatprep.subr.mxu1 %v48_v30  ;;  %v2616_v44 = vld [vmem:[#allocation3 + $0x50] sm:$0xff]  ;;  %v2623_v46 = vld [vmem:[#allocation3 + $0x38] sm:$0xff]  ;;  %v2638_v50 = vld [vmem:[#allocation3 + $0x20] sm:$0xff] }
  0x1e   :  { %417 = vmatpush1.msra.mxu0 %v2517_v18  ;;  %1948 = vmatpush3.msra.mxu1 %v48_v30  ;;  %v2627_v47 = vld [vmem:[#allocation3 + $0x178] sm:$0xff]  ;;  %v2631_v48 = vld [vmem:[#allocation3 + $0x30] sm:$0xff]  ;;  %3464 = vst [vmem:[#allocation10_spill] sm:$0xff] %v2638_v50  ;;  %v2645_v52 = vld [vmem:[#allocation3 + $0x8] sm:$0xff] }
  0x1f   :  { %1765 = vmatmul.mubr.msk.f32.gmra.mxu0 %vm72_vm0, %v2527_v20  ;;  %418 = vmatprep.subr.mxu0 %v2529_v21  ;;  %v42_v49 = vld [vmem:[%s3431_s0 + $0x38] sm:$0xff]  ;;  %3466 = vst [vmem:[#allocation12_spill] sm:$0xff] %v2645_v52  ;;  %v2648_v53 = vld [vmem:[#allocation3 + $0x160] sm:$0xff]  ;;  %v2656_v55 = vld [vmem:[#allocation3 + $0x148] sm:$0xff] }
  0x20   :  { %419 = vmatpush1.msra.mxu0 %v2532_v22  ;;  %179 = vmatprep.mubr.f32.mxu0 %v3437_v0  ;;  %v2641_v51 = vld [vmem:[#allocation3 + $0x18] sm:$0xff]  ;;  %v2652_v54 = vld [vmem:[#allocation3] sm:$0xff]  ;;  %v2662_v56 = vld [vmem:[#allocation3 + $0x130] sm:$0xff] }
  0x21   :  { %420 = vmatprep.subr.mxu0 %v2535_v23  ;;  %1949 = vmatprep.subr.mxu1 %v45_v36  ;;  %3465 = vst [vmem:[#allocation11_spill] sm:$0xff] %v2641_v51  ;;  %3467 = vst [vmem:[#allocation13_spill] sm:$0xff] %v2652_v54  ;;  %v2667_v57 = vld [vmem:[#allocation3 + $0x118] sm:$0xff]  ;;  %v2674_v58 = vld [vmem:[#allocation3 + $0x100] sm:$0xff] }
  0x22   :  { %421 = vmatpush1.msra.mxu0 %v2543_v25  ;;  %1950 = vmatpush3.msra.mxu1 %v45_v36  ;;  %v2682_v59 = vld [vmem:[#allocation3 + $0xe8] sm:$0xff]  ;;  %v2688_v60 = vld [vmem:[#allocation3 + $0xd0] sm:$0xff]  ;;  %v2695_v61 = vld [vmem:[#allocation3 + $0xb8] sm:$0xff] }
  0x23   :  { %1766 = vmatmul.mubr.msk.f32.gmra.mxu0 %vm72_vm0, %v2550_v26  ;;  %422 = vmatprep.subr.mxu0 %v2552_v27  ;;  %v2701_v62 = vld [vmem:[#allocation3 + $0xa0] sm:$0xff]  ;;  %v2708_v63 = vld [vmem:[#allocation3 + $0x88] sm:$0xff]  ;;  %v2714_v1 = vld [vmem:[#allocation3 + $0x70] sm:$0xff] }
  0x24   :  { %423 = vmatpush1.msra.mxu0 %v2555_v28  ;;  %185 = vmatprep.mubr.f32.mxu0 %v3437_v0  ;;  %v2720_v2 = vld [vmem:[#allocation3 + $0x58] sm:$0xff]  ;;  %v2726_v3 = vld [vmem:[#allocation3 + $0x40] sm:$0xff]  ;;  %v2732_v4 = vld [vmem:[#allocation3 + $0x28] sm:$0xff] }
  0x25   :  { %424 = vmatprep.subr.mxu0 %v2558_v29  ;;  %1963 = vmatprep.subr.mxu1 %v3437_v0  ;;  %3468 = vst [vmem:[#allocation14_spill] sm:$0xff] %v2726_v3  ;;  %3469 = vst [vmem:[#allocation15_spill] sm:$0xff] %v2732_v4  ;;  %v2738_v5 = vld [vmem:[#allocation3 + $0x10] sm:$0xff]  ;;  %v55_v9 = vld [vmem:[%s3434_s3] sm:$0x7] }
  0x26   :  { %425 = vmatpush1.msra.mxu0 %v2566_v31  ;;  %1952 = vmatmul.mubr.msk.f32.vlgmr.msra.gmra.mxu1 %vm72_vm0, %v2504_v14  ;;  %3470 = vst [vmem:[#allocation16_spill] sm:$0xff] %v2738_v5  ;;  %v60_v24 = vrot.slane %v55_v9, %v59_v8  ;;  %v64_v30 = vrot.slane %v55_v9, %v63_v19 }
  0x27   :  { %1767 = vmatmul.mubr.msk.f32.gmra.mxu0 %vm72_vm0, %v2573_v32  ;;  %426 = vmatprep.subr.mxu0 %v2575_v33 }
  0x28   :  { %427 = vmatpush1.msra.mxu0 %v2578_v34  ;;  %191 = vmatprep.mubr.f32.mxu0 %v3437_v0 }
  0x29   :  { %428 = vmatprep.subr.mxu0 %v2581_v35  ;;  %1964 = vmatpush3.msra.mxu1 %v2627_v47 }
  0x2a   :  { %429 = vmatpush1.msra.mxu0 %v2589_v37  ;;  %1965 = vmatprep.subr.mxu1 %v3437_v0 }
  0x2b   :  { %1768 = vmatmul.mubr.msk.f32.gmra.mxu0 %vm72_vm0, %v2596_v38  ;;  %430 = vmatprep.subr.mxu0 %v2598_v39 }
  0x2c   :  { %431 = vmatpush1.msra.mxu0 %v2601_v40  ;;  %197 = vmatprep.mubr.f32.mxu0 %v3437_v0 }
  0x2d   :  { %432 = vmatprep.subr.mxu0 %v2604_v41  ;;  %1966 = vmatpush3.msra.mxu1 %v2648_v53 }
  0x2e   :  { %433 = vmatpush1.msra.mxu0 %v2609_v42  ;;  %1967 = vmatprep.subr.mxu1 %v3437_v0 }
  0x2f   :  { %1769 = vmatmul.mubr.msk.f32.gmra.mxu0 %vm72_vm0, %v41_v43  ;;  %434 = vmatprep.subr.mxu0 %v2616_v44 }
  0x30   :  { %435 = vmatpush1.msra.mxu0 %v2619_v45  ;;  %203 = vmatprep.mubr.f32.mxu0 %v3437_v0 }
  0x31   :  { %436 = vmatprep.subr.mxu0 %v2623_v46  ;;  %1968 = vmatpush3.msra.mxu1 %v2656_v55 }
  0x32   :  { %437 = vmatpush1.msra.mxu0 %v2631_v48  ;;  %1969 = vmatprep.subr.mxu1 %v3437_v0 }
  0x33   :  { %1770 = vmatmul.mubr.msk.f32.gmra.mxu0 %vm72_vm0, %v42_v49  ;;  %438 = vmatprep.subr.mxu0 %v2638_v50 }
  0x34   :  { %439 = vmatpush1.msra.mxu0 %v2641_v51  ;;  %474 = vmatprep.mubr.f32.mxu0 %v3437_v0 }
  0x35   :  { %440 = vmatprep.subr.mxu0 %v2645_v52  ;;  %1954 = vmatprep.mubr.msk.f32.mxu1 %vm72_vm0, %v2527_v20 }
  0x36   :  { %441 = vmatpush1.msra.mxu0 %v2652_v54  ;;  %1970 = vmatpush3.msra.mxu1 %v2662_v56 }
  0x37   :  { %475 = vmatmul.mubr.f32.vlgmr.msra.gmra.mxu0 %v3437_v0  ;;  %577 = vmatprep.subr.mxu0 %v2489_v10 }
  0x38   :  { %1971 = vmatprep.subr.mxu1 %v3437_v0  ;;  %1955 = vmatmul.mubr.msk.f32.gmra.mxu1 %vm72_vm0, %v2550_v26 }
  0x39   :  { %1972 = vmatpush3.msra.mxu1 %v2667_v57  ;;  %1957 = vmatprep.mubr.msk.f32.mxu1 %vm72_vm0, %v2573_v32 }
  0x3a   :  { %1973 = vmatprep.subr.mxu1 %v3437_v0  ;;  %578 = vmatpush1.msra.mxu0 %v2491_v11 }
  0x3b   :  { %1974 = vmatpush3.msra.mxu1 %v2674_v58  ;;  %579 = vmatprep.subr.mxu0 %v2493_v12 }
  0x3c   :  { %1975 = vmatprep.subr.mxu1 %v3437_v0  ;;  %1958 = vmatmul.mubr.msk.f32.gmra.mxu1 %vm72_vm0, %v2596_v38 }
  0x3d   :  { %1976 = vmatpush3.msra.mxu1 %v2682_v59  ;;  %1960 = vmatprep.mubr.msk.f32.mxu1 %vm72_vm0, %v41_v43 }
  0x3e   :  { %1977 = vmatprep.subr.mxu1 %v3437_v0  ;;  %580 = vmatpush1.msra.mxu0 %v2497_v13 }
  0x3f   :  { %1978 = vmatpush3.msra.mxu1 %v2688_v60  ;;  %581 = vmatprep.subr.mxu0 %v2506_v15 }
  0x40   :  { %1979 = vmatprep.subr.mxu1 %v3437_v0  ;;  %1961 = vmatmul.mubr.msk.f32.gmra.mxu1 %vm72_vm0, %v42_v49 }
  0x41   :  { %1980 = vmatpush3.msra.mxu1 %v2695_v61  ;;  %1995 = vmatprep.mubr.msk.f32.mxu1 %vm2425_vm1, %v3437_v0 }
  0x42   :  { %1981 = vmatprep.subr.mxu1 %v3437_v0  ;;  %582 = vmatpush1.msra.mxu0 %v2509_v16 }
  0x43   :  { %1982 = vmatpush3.msra.mxu1 %v2701_v62  ;;  %583 = vmatprep.subr.mxu0 %v2512_v17 }
  0x44   :  { %1983 = vmatprep.subr.mxu1 %v3437_v0  ;;  %584 = vmatpush1.msra.mxu0 %v2517_v18 }
  0x45   :  { %1984 = vmatpush3.msra.mxu1 %v2708_v63  ;;  %585 = vmatprep.subr.mxu0 %v2529_v21 }
  0x46   :  { %1985 = vmatprep.subr.mxu1 %v3437_v0  ;;  %586 = vmatpush1.msra.mxu0 %v2532_v22 }
  0x47   :  { %1986 = vmatpush3.msra.mxu1 %v2714_v1  ;;  %587 = vmatprep.subr.mxu0 %v2535_v23 }
  0x48   :  { %1987 = vmatprep.subr.mxu1 %v3437_v0  ;;  %588 = vmatpush1.msra.mxu0 %v2543_v25 }
  0x49   :  { %1988 = vmatpush3.msra.mxu1 %v2720_v2  ;;  %589 = vmatprep.subr.mxu0 %v2552_v27 }
  0x4a   :  { %1989 = vmatprep.subr.mxu1 %v3437_v0  ;;  %590 = vmatpush1.msra.mxu0 %v2555_v28 }
  0x4b   :  { %1990 = vmatpush3.msra.mxu1 %v2726_v3  ;;  %591 = vmatprep.subr.mxu0 %v2558_v29 }
  0x4c   :  { %1991 = vmatprep.subr.mxu1 %v3437_v0  ;;  %592 = vmatpush1.msra.mxu0 %v2566_v31 }
  0x4d   :  { %1992 = vmatpush3.msra.mxu1 %v2732_v4  ;;  %593 = vmatprep.subr.mxu0 %v2575_v33 }
  0x4e   :  { %1993 = vmatprep.subr.mxu1 %v3437_v0  ;;  %594 = vmatpush1.msra.mxu0 %v2578_v34 }
  0x4f   :  { %1994 = vmatpush3.msra.mxu1 %v2738_v5  ;;  %595 = vmatprep.subr.mxu0 %v2581_v35 }
  0x50   :  { %1996 = vmatmul.mubr.f32.vlgmr.msra.gmra.mxu1 %v3437_v0  ;;  %1998 = vmatprep.subr.mxu1 %v3437_v0 }
  0x51   :  { %1999 = vmatpush3.msra.mxu1 %v2627_v47  ;;  %596 = vmatpush1.msra.mxu0 %v2589_v37 }
  0x52   :  { %2000 = vmatprep.subr.mxu1 %v3437_v0  ;;  %597 = vmatprep.subr.mxu0 %v2598_v39 }
  0x53   :  { %2001 = vmatpush3.msra.mxu1 %v2648_v53  ;;  %598 = vmatpush1.msra.mxu0 %v2601_v40 }
  0x54   :  { %2002 = vmatprep.subr.mxu1 %v3437_v0  ;;  %599 = vmatprep.subr.mxu0 %v2604_v41 }
  0x55   :  { %2003 = vmatpush3.msra.mxu1 %v2656_v55  ;;  %600 = vmatpush1.msra.mxu0 %v2609_v42 }
  0x56   :  { %2004 = vmatprep.subr.mxu1 %v3437_v0  ;;  %601 = vmatprep.subr.mxu0 %v2616_v44 }
  0x57   :  { %2005 = vmatpush3.msra.mxu1 %v2662_v56  ;;  %602 = vmatpush1.msra.mxu0 %v2619_v45 }
  0x58   :  { %2006 = vmatprep.subr.mxu1 %v3437_v0  ;;  %603 = vmatprep.subr.mxu0 %v2623_v46 }
  0x59   :  { %2007 = vmatpush3.msra.mxu1 %v2667_v57  ;;  %604 = vmatpush1.msra.mxu0 %v2631_v48 }
  0x5a   :  { %2008 = vmatprep.subr.mxu1 %v3437_v0  ;;  %605 = vmatprep.subr.mxu0 %v2638_v50 }
  0x5b   :  { %2009 = vmatpush3.msra.mxu1 %v2674_v58  ;;  %606 = vmatpush1.msra.mxu0 %v2641_v51  ;;  %v67_v51 = vsub.s32 2, %v2798_v7 }
  0x5c   :  { %2010 = vmatprep.subr.mxu1 %v3437_v0  ;;  %607 = vmatprep.subr.mxu0 %v2645_v52 }
  0x5d   :  { %2011 = vmatpush3.msra.mxu1 %v2682_v59  ;;  %608 = vmatpush1.msra.mxu0 %v2652_v54 }
  0x5e   :  { %2012 = vmatprep.subr.mxu1 %v3437_v0  ;;  %641 = vmatprep.mubr.f32.mxu0 %v3437_v0 }
  0x5f   :  { %2013 = vmatpush3.msra.mxu1 %v2688_v60  ;;  %2030 = vmatprep.mubr.msk.f32.mxu1 %vm2425_vm1, %v3437_v0 }
  0x60   :  { %2014 = vmatprep.subr.mxu1 %v3437_v0  ;;  %744 = vmatprep.subr.mxu0 %v2489_v10 }
  0x61   :  { %2015 = vmatpush3.msra.mxu1 %v2695_v61 }
  0x62   :  { %2016 = vmatprep.subr.mxu1 %v3437_v0 }
  0x63   :  { %2017 = vmatpush3.msra.mxu1 %v2701_v62 }
  0x64   :  { %2018 = vmatprep.subr.mxu1 %v3437_v0 }
  0x65   :  { %2019 = vmatpush3.msra.mxu1 %v2708_v63 }
  0x66   :  { %2020 = vmatprep.subr.mxu1 %v3437_v0 }
  0x67   :  { %2021 = vmatpush3.msra.mxu1 %v2714_v1 }
  0x68   :  { %2022 = vmatprep.subr.mxu1 %v3437_v0 }
  0x69   :  { %2023 = vmatpush3.msra.mxu1 %v2720_v2 }
  0x6a   :  { %2024 = vmatprep.subr.mxu1 %v3437_v0 }
  0x6b   :  { %2025 = vmatpush3.msra.mxu1 %v2726_v3 }
  0x6c   :  { %2026 = vmatprep.subr.mxu1 %v3437_v0 }
  0x6d   :  { %2027 = vmatpush3.msra.mxu1 %v2732_v4 }
  0x6e   :  { %2028 = vmatprep.subr.mxu1 %v3437_v0 }
  0x6f   :  { %2029 = vmatpush3.msra.mxu1 %v2738_v5 }
  0x70   :  { %2033 = vmatprep.subr.mxu1 %v3437_v0 }
  0xd7   :  { %v163_v14 = vpop.f32.mrf.mxu0 }
  0xd9   :  { %v165_v20 = vpop.f32.mrf.mxu0 }
  0xdb   :  { %v169_v26 = vpop.f32.mrf.mxu0 }
  0xdc   :  { %v2805_v32 = vadd.f32 %v169_v26, %v60_v24 }
  0xdd   :  { %v171_v36 = vpop.f32.mrf.mxu0 }
  0xde   :  { %3471 = vst [vmem:[#allocation17_spill] sm:$0xff] %v2805_v32  ;;  %v2807_v38 = vadd.f32 %v171_v36, %v64_v30 }
  0xdf   :  { %v175_v43 = vpop.f32.mrf.mxu0 }
  0xe0   :  { %3472 = vst [vmem:[#allocation18_spill] sm:$0xff] %v2807_v38  ;;  %v2809_v49 = vadd.f32 %v175_v43, %v60_v24  ;;  %v68_v43 = vrot.slane %v55_v9, %v67_v51 }
  0xe1   :  { %v177_v6 = vpop.f32.mrf.mxu0 }
  0xe2   :  { %3473 = vst [vmem:[#allocation19_spill] sm:$0xff] %v2809_v49  ;;  %v2811_v0 = vadd.f32 %v177_v6, %v64_v30 }
  0xe3   :  { %v181_v10 = vpop.f32.mrf.mxu0 }
  0xe4   :  { %3474 = vst [vmem:[#allocation20_spill] sm:$0xff] %v2811_v0  ;;  %v2813_v5 = vadd.f32 %v181_v10, %v60_v24 }
  0xe5   :  { %v183_v54 = vpop.f32.mrf.mxu0 }
  0xe6   :  { %3475 = vst [vmem:[#allocation21_spill] sm:$0xff] %v2813_v5  ;;  %v2815_v52 = vadd.f32 %v183_v54, %v64_v30  ;;  %v1953_v10 = vpop.f32.mrf.mxu1 }
  0xe7   :  { %v187_v4 = vpop.f32.mrf.mxu0  ;;  %v2826_v50 = vadd.f32 %v1953_v10, %v68_v43  ;;  %v164_v10 = vadd.f32 %v163_v14, %v60_v24 }
  0xe8   :  { %3476 = vst [vmem:[#allocation22_spill] sm:$0xff] %v2815_v52  ;;  %v2818_v26 = vadd.f32 %v187_v4, %v60_v24  ;;  %v339_v4 = vld [vmem:[%s3435_s4] sm:$0x7]  ;;  %s2426_s4 = smov [#allocation6]  }
  0xe9   :  { %v189_v32 = vpop.f32.mrf.mxu0  ;;  %3481 = vst [vmem:[#allocation27_spill] sm:$0xff] %v2826_v50  ;;  %s1747_s14 = sshll.u32 %s2426_s4, 4  ;;  %s1748_s14 = int_to_ptr.vmem [resolvable:$true] %s1747_s14 }
  0xea   :  { %3477 = vst [vmem:[#allocation23_spill] sm:$0xff] %v2818_v26  ;;  %v2820_v36 = vadd.f32 %v189_v32, %v64_v30  ;;  %s2397_s15 = scalar_lea.vmem %s1748_s14, 128  ;;  %p2402_p6 = scmp.lt.s32.totalorder %s1748_s14, %s1748_s14 }
  0xeb   :  { %v193_v38 = vpop.f32.mrf.mxu0  ;;  %p2398_p5 = scmp.ne.s32.totalorder %s1748_s14, %s2397_s15  ;;  %p2403_p7 = scmp.lt.s32.totalorder %s2397_s15, %s2397_s15 }
  0xec   :  { %3478 = vst [vmem:[#allocation24_spill] sm:$0xff] %v2820_v36  ;;  %v2822_v49 = vadd.f32 %v193_v38, %v60_v24  ;;  %v2837_v38 = vrot.slane %v339_v4, %v59_v8 }
  0xed   :  { %v195_v6 = vpop.f32.mrf.mxu0  ;;  %p2404_p8 = por %p2403_p7, %p2402_p6 }
  0xee   :  { %3479 = vst [vmem:[#allocation25_spill] sm:$0xff] %v2822_v49  ;;  %v2824_v0 = vadd.f32 %v195_v6, %v64_v30  ;;  %3485 = vst [vmem:[#allocation31_spill] sm:$0xff] %v2837_v38 }
  0xef   :  { %v199_v5 = vpop.f32.mrf.mxu0  ;;  %p2405_p9 = pnand %p2404_p8, %p2398_p5 }
  0xf0   :  { %3480 = vst [vmem:[#allocation26_spill] sm:$0xff] %v2824_v0  ;;  %v2828_v54 = vadd.f32 %v199_v5, %v60_v24 }
  0xf1   :  { %v201_v52 = vpop.f32.mrf.mxu0 }
  0xf2   :  { %3482 = vst [vmem:[#allocation28_spill] sm:$0xff] %v2828_v54  ;;  %v2833_v7 = vadd.f32 %v201_v52, %v64_v30  ;;  %v276_v54 = vpop.f32.mrf.mxu1 }
  0xf3   :  { %v205_v32 = vpop.f32.mrf.mxu0 }
  0xf4   :  { %3483 = vst [vmem:[#allocation29_spill] sm:$0xff] %v2833_v7  ;;  %v2835_v9 = vadd.f32 %v205_v32, %v60_v24  ;;  %v2844_v7 = vrot.slane %v339_v4, %v63_v19 }
  0xf5   :  { %v207_v6 = vpop.f32.mrf.mxu0 }
  0xf6   :  { %3484 = vst [vmem:[#allocation30_spill] sm:$0xff] %v2835_v9  ;;  %v2839_v0 = vadd.f32 %v207_v6, %v64_v30 }
  0xf7   :  { %v476_v49 = vpop.f32.mrf.mxu0 }
  0xf8   :  { %3486 = vst [vmem:[#allocation32_spill] sm:$0xff] %v2839_v0  ;;  %v477_v5 = vadd.f32 %v476_v49, %v2837_v38  ;;  %v1956_v26 = vpop.f32.mrf.mxu1 }
  0xf9   :  { %v2842_v50 = vadd.f32 %v1956_v26, %v68_v43  ;;  %v478_v8 = vpop.f32.mrf.mxu0 }
  0xfa   :  { %v551_v36 = vadd.f32 %v477_v5, %v164_v10  ;;  %v286_v52 = vpop.f32.mrf.mxu1  ;;  %v479_v14 = vadd.f32 %v478_v8, %v2844_v7  ;;  %v166_v10 = vadd.f32 %v165_v20, %v64_v30  ;;  %v277_v20 = vadd.f32 %v276_v54, %v68_v43  ;;  %v3495_v54 = vld [vmem:[#allocation10_spill] sm:$0xff] }
  0xfb   :  { %3487 = vst [vmem:[#allocation33_spill] sm:$0xff] %v2842_v50  ;;  %v2846_v32 = vadd.f32 %v286_v52, %v68_v43 }
  0xfc   :  { %v1779_v3 = vmul.f32 -1.442695, %v551_v36  ;;  %v1959_v9 = vpop.f32.mrf.mxu1  ;;  %v558_v5 = vadd.f32 %v479_v14, %v166_v10 }
  0xfd   :  { %3488 = vst [vmem:[#allocation34_spill] sm:$0xff] %v2846_v32  ;;  %v2848_v6 = vadd.f32 %v1959_v9, %v68_v43 }
  0xfe   :  { %2249 = vpow2.f32 %v1779_v3  ;;  %v296_v0 = vpop.f32.mrf.mxu1  ;;  %v1780_v52 = vmul.f32 -1.442695, %v558_v5 }
  0xff   :  { %3489 = vst [vmem:[#allocation35_spill] sm:$0xff] %v2848_v6  ;;  %v2851_v24 = vadd.f32 %v296_v0, %v68_v43  ;;  %v2857_v6 = vrot.slane %v339_v4, %v67_v51  ;;  %v3493_v51 = vmov 0.0   ;;  %v3496_v4 = vld [vmem:[#allocation11_spill] sm:$0xff] }
 0x100   :  { %v1962_v49 = vpop.f32.mrf.mxu1  ;;  %2251 = vpow2.f32 %v1780_v52  ;;  %v3500_v52 = vld [vmem:[#allocation16_spill] sm:$0xff] }
 0x101   :  { %3490 = vst [vmem:[#allocation36_spill] sm:$0xff] %v2851_v24  ;;  %v2853_v26 = vadd.f32 %v1962_v49, %v68_v43 }
 0x102   :  { %v306_v36 = vpop.f32.mrf.mxu1 }
 0x103   :  { %3491 = vst [vmem:[#allocation37_spill] sm:$0xff] %v2853_v26  ;;  %v2855_v19 = vadd.f32 %v306_v36, %v68_v43  ;;  %v3494_v43 = vld [vmem:[#allocation14_spill] sm:$0xff] }
 0x105   :  { %3492 = vst [vmem:[#allocation38_spill] sm:$0xff] %v2855_v19 }
 0x10b   :  { %v2250_v50 = vpop.eup %2249 }
 0x10c   :  { %v555_v3 = vadd.f32 1.0, %v2250_v50 }
 0x10d   :  { %v2252_v8 = vpop.eup %2251 }
 0x10e   :  { %2253 = vrcp.f32 %v555_v3  ;;  %v562_v49 = vadd.f32 1.0, %v2252_v8  ;;  %v3501_v3 = vld [vmem:[#allocation9_spill] sm:$0xff] }
 0x110   :  { %v547_v9 = vpop.f32.mrf.mxu1 }
 0x111   :  { %v548_v0 = vadd.f32 %v547_v9, %v2857_v6 }
 0x112   :  { %v1997_v32 = vpop.f32.mrf.mxu1 }
 0x113   :  { %v3497_v32 = vld [vmem:[#allocation15_spill] sm:$0xff] }
 0x11b   :  { %v2254_v24 = vpop.eup %2253 }
 0x11c   :  { %v565_v30 = vmul.f32 %v2254_v24, %v548_v0  ;;  %v3498_v24 = vld [vmem:[#allocation12_spill] sm:$0xff] }
 0x11e   :  { %v566_v26 = vadd.f32 %v565_v30, %v277_v20  ;;  %v3502_v30 = vld [vmem:[#allocation17_spill] sm:$0xff] }
 0x120   :  { %2255 = vtanh.f32 %v566_v26  ;;  %v3499_v26 = vld [vmem:[#allocation13_spill] sm:$0xff] }
 0x121   :  { %2257 = vrcp.f32 %v562_v49 }
 0x12d   :  { %v2256_v14 = vpop.eup %2255 }
 0x12e   :  { %v568_v10 = vsub.f32 0.0, %v2256_v14  ;;  %v2258_v36 = vpop.eup %2257 }
 0x130   :  { %v569_v50 = vmul.f32 %v2258_v36, %v568_v10 }
 0x132   :  { %v2860_v5 = vadd.f32 %v2256_v14, %v569_v50  ;;  %v3503_v50 = vld [vmem:[#allocation18_spill] sm:$0xff] }
 0x134   :  { %642 = vmatmul.mubr.f32.vlgmr.msra.gmra.mxu0 %v2860_v5  ;;  %2031 = vmatmul.mubr.f32.vlgmr.msra.gmra.mxu1 %v2860_v5 }
 0x135   :  { %745 = vmatpush1.msra.mxu0 %v2491_v11  ;;  %2034 = vmatpush3.msra.mxu1 %v2627_v47 }
 0x136   :  { %746 = vmatprep.subr.mxu0 %v2493_v12  ;;  %2035 = vmatprep.subr.mxu1 %v3493_v51 }
 0x137   :  { %747 = vmatpush1.msra.mxu0 %v2497_v13  ;;  %2036 = vmatpush3.msra.mxu1 %v2648_v53 }
 0x138   :  { %748 = vmatprep.subr.mxu0 %v2506_v15  ;;  %2037 = vmatprep.subr.mxu1 %v3493_v51 }
 0x139   :  { %749 = vmatpush1.msra.mxu0 %v2509_v16  ;;  %2038 = vmatpush3.msra.mxu1 %v2656_v55 }
 0x13a   :  { %750 = vmatprep.subr.mxu0 %v2512_v17  ;;  %2039 = vmatprep.subr.mxu1 %v3493_v51 }
 0x13b   :  { %751 = vmatpush1.msra.mxu0 %v2517_v18  ;;  %2040 = vmatpush3.msra.mxu1 %v2662_v56 }
 0x13c   :  { %752 = vmatprep.subr.mxu0 %v2529_v21  ;;  %2041 = vmatprep.subr.mxu1 %v3493_v51 }
 0x13d   :  { %753 = vmatpush1.msra.mxu0 %v2532_v22  ;;  %2042 = vmatpush3.msra.mxu1 %v2667_v57 }
 0x13e   :  { %754 = vmatprep.subr.mxu0 %v2535_v23  ;;  %2043 = vmatprep.subr.mxu1 %v3493_v51 }
 0x13f   :  { %755 = vmatpush1.msra.mxu0 %v2543_v25  ;;  %2044 = vmatpush3.msra.mxu1 %v2674_v58 }
 0x140   :  { %756 = vmatprep.subr.mxu0 %v2552_v27  ;;  %2045 = vmatprep.subr.mxu1 %v3493_v51 }
 0x141   :  { %757 = vmatpush1.msra.mxu0 %v2555_v28  ;;  %2046 = vmatpush3.msra.mxu1 %v2682_v59 }
 0x142   :  { %758 = vmatprep.subr.mxu0 %v2558_v29  ;;  %2047 = vmatprep.subr.mxu1 %v3493_v51 }
 0x143   :  { %759 = vmatpush1.msra.mxu0 %v2566_v31  ;;  %2048 = vmatpush3.msra.mxu1 %v2688_v60 }
 0x144   :  { %760 = vmatprep.subr.mxu0 %v2575_v33  ;;  %2049 = vmatprep.subr.mxu1 %v3493_v51 }
 0x145   :  { %761 = vmatpush1.msra.mxu0 %v2578_v34  ;;  %2050 = vmatpush3.msra.mxu1 %v2695_v61 }
 0x146   :  { %762 = vmatprep.subr.mxu0 %v2581_v35  ;;  %2051 = vmatprep.subr.mxu1 %v3493_v51 }
 0x147   :  { %763 = vmatpush1.msra.mxu0 %v2589_v37  ;;  %2052 = vmatpush3.msra.mxu1 %v2701_v62 }
 0x148   :  { %764 = vmatprep.subr.mxu0 %v2598_v39  ;;  %2053 = vmatprep.subr.mxu1 %v3493_v51 }
 0x149   :  { %765 = vmatpush1.msra.mxu0 %v2601_v40  ;;  %2054 = vmatpush3.msra.mxu1 %v2708_v63 }
 0x14a   :  { %766 = vmatprep.subr.mxu0 %v2604_v41  ;;  %2055 = vmatprep.subr.mxu1 %v3493_v51 }
 0x14b   :  { %767 = vmatpush1.msra.mxu0 %v2609_v42  ;;  %2056 = vmatpush3.msra.mxu1 %v2714_v1 }
 0x14c   :  { %768 = vmatprep.subr.mxu0 %v2616_v44  ;;  %2057 = vmatprep.subr.mxu1 %v3493_v51 }
 0x14d   :  { %769 = vmatpush1.msra.mxu0 %v2619_v45  ;;  %2058 = vmatpush3.msra.mxu1 %v2720_v2 }
 0x14e   :  { %770 = vmatprep.subr.mxu0 %v2623_v46  ;;  %2059 = vmatprep.subr.mxu1 %v3493_v51 }
 0x14f   :  { %771 = vmatpush1.msra.mxu0 %v2631_v48  ;;  %2060 = vmatpush3.msra.mxu1 %v3494_v43 }
 0x150   :  { %772 = vmatprep.subr.mxu0 %v3495_v54  ;;  %2061 = vmatprep.subr.mxu1 %v3493_v51 }
 0x151   :  { %773 = vmatpush1.msra.mxu0 %v3496_v4  ;;  %2062 = vmatpush3.msra.mxu1 %v3497_v32 }
 0x152   :  { %774 = vmatprep.subr.mxu0 %v3498_v24  ;;  %2063 = vmatprep.subr.mxu1 %v3493_v51 }
 0x153   :  { %775 = vmatpush1.msra.mxu0 %v3499_v26  ;;  %808 = vmatprep.mubr.f32.mxu0 %v3493_v51 }
 0x154   :  { %2064 = vmatpush3.msra.mxu1 %v3500_v52  ;;  %2065 = vmatprep.mubr.msk.f32.mxu1 %vm2425_vm1, %v3493_v51 }
 0x155   :  { %911 = vmatprep.subr.mxu0 %v3501_v3  ;;  %2068 = vmatprep.subr.mxu1 %v3493_v51 }
 0x1f4   :  { %v643_v9 = vpop.f32.mrf.mxu0  ;;  %v714_v0 = vpop.f32.mrf.mxu1 }
 0x1f5   :  { %v644_v8 = vadd.f32 %v643_v9, %v2837_v38  ;;  %v715_v32 = vadd.f32 %v714_v0, %v2857_v6  ;;  %v3511_v0 = vld [vmem:[#allocation31_spill] sm:$0xff] }
 0x1f6   :  { %v2032_v20 = vpop.f32.mrf.mxu1  ;;  %v645_v10 = vpop.f32.mrf.mxu0 }
 0x1f7   :  { %v718_v49 = vadd.f32 %v644_v8, %v3502_v30  ;;  %v646_v36 = vadd.f32 %v645_v10, %v2844_v7  ;;  %v3504_v20 = vld [vmem:[#allocation27_spill] sm:$0xff] }
 0x1f9   :  { %v1781_v14 = vmul.f32 -1.442695, %v718_v49  ;;  %v725_v19 = vadd.f32 %v646_v36, %v3503_v50 }
 0x1fb   :  { %2259 = vpow2.f32 %v1781_v14  ;;  %v1782_v52 = vmul.f32 -1.442695, %v725_v19 }
 0x1fd   :  { %2261 = vpow2.f32 %v1782_v52 }
 0x208   :  { %v2260_v26 = vpop.eup %2259 }
 0x209   :  { %v722_v24 = vadd.f32 1.0, %v2260_v26  ;;  %v3510_v26 = vld [vmem:[#allocation9_spill] sm:$0xff] }
 0x20a   :  { %v2262_v3 = vpop.eup %2261 }
 0x20b   :  { %2263 = vrcp.f32 %v722_v24  ;;  %v729_v8 = vadd.f32 1.0, %v2262_v3  ;;  %v3509_v24 = vld [vmem:[#allocation16_spill] sm:$0xff] }
 0x218   :  { %v2264_v4 = vpop.eup %2263 }
 0x219   :  { %v732_v9 = vmul.f32 %v2264_v4, %v715_v32  ;;  %v3507_v4 = vld [vmem:[#allocation12_spill] sm:$0xff]  ;;  %v3508_v32 = vld [vmem:[#allocation13_spill] sm:$0xff] }
 0x21b   :  { %v733_v38 = vadd.f32 %v732_v9, %v3504_v20  ;;  %v3512_v9 = vld [vmem:[#allocation19_spill] sm:$0xff] }
 0x21d   :  { %2265 = vtanh.f32 %v733_v38  ;;  %v3505_v38 = vld [vmem:[#allocation11_spill] sm:$0xff] }
 0x21e   :  { %2267 = vrcp.f32 %v729_v8 }
 0x22a   :  { %v2266_v30 = vpop.eup %2265 }
 0x22b   :  { %v735_v49 = vsub.f32 %v2860_v5, %v2266_v30  ;;  %v2268_v14 = vpop.eup %2267  ;;  %v3506_v5 = vld [vmem:[#allocation15_spill] sm:$0xff] }
 0x22d   :  { %v736_v10 = vmul.f32 %v2268_v14, %v735_v49  ;;  %v3513_v14 = vld [vmem:[#allocation20_spill] sm:$0xff] }
 0x22f   :  { %v2938_v19 = vadd.f32 %v2266_v30, %v736_v10 }
 0x231   :  { %809 = vmatmul.mubr.f32.vlgmr.msra.gmra.mxu0 %v2938_v19  ;;  %2066 = vmatmul.mubr.f32.vlgmr.msra.gmra.mxu1 %v2938_v19 }
 0x232   :  { %912 = vmatpush1.msra.mxu0 %v2491_v11  ;;  %2069 = vmatpush3.msra.mxu1 %v2627_v47 }
 0x233   :  { %913 = vmatprep.subr.mxu0 %v2493_v12  ;;  %2070 = vmatprep.subr.mxu1 %v3493_v51 }
 0x234   :  { %914 = vmatpush1.msra.mxu0 %v2497_v13  ;;  %2071 = vmatpush3.msra.mxu1 %v2648_v53 }
 0x235   :  { %915 = vmatprep.subr.mxu0 %v2506_v15  ;;  %2072 = vmatprep.subr.mxu1 %v3493_v51 }
 0x236   :  { %916 = vmatpush1.msra.mxu0 %v2509_v16  ;;  %2073 = vmatpush3.msra.mxu1 %v2656_v55 }
 0x237   :  { %917 = vmatprep.subr.mxu0 %v2512_v17  ;;  %2074 = vmatprep.subr.mxu1 %v3493_v51 }
 0x238   :  { %918 = vmatpush1.msra.mxu0 %v2517_v18  ;;  %2075 = vmatpush3.msra.mxu1 %v2662_v56 }
 0x239   :  { %919 = vmatprep.subr.mxu0 %v2529_v21  ;;  %2076 = vmatprep.subr.mxu1 %v3493_v51 }
 0x23a   :  { %920 = vmatpush1.msra.mxu0 %v2532_v22  ;;  %2077 = vmatpush3.msra.mxu1 %v2667_v57 }
 0x23b   :  { %921 = vmatprep.subr.mxu0 %v2535_v23  ;;  %2078 = vmatprep.subr.mxu1 %v3493_v51 }
 0x23c   :  { %922 = vmatpush1.msra.mxu0 %v2543_v25  ;;  %2079 = vmatpush3.msra.mxu1 %v2674_v58 }
 0x23d   :  { %923 = vmatprep.subr.mxu0 %v2552_v27  ;;  %2080 = vmatprep.subr.mxu1 %v3493_v51 }
 0x23e   :  { %924 = vmatpush1.msra.mxu0 %v2555_v28  ;;  %2081 = vmatpush3.msra.mxu1 %v2682_v59 }
 0x23f   :  { %925 = vmatprep.subr.mxu0 %v2558_v29  ;;  %2082 = vmatprep.subr.mxu1 %v3493_v51 }
 0x240   :  { %926 = vmatpush1.msra.mxu0 %v2566_v31  ;;  %2083 = vmatpush3.msra.mxu1 %v2688_v60 }
 0x241   :  { %927 = vmatprep.subr.mxu0 %v2575_v33  ;;  %2084 = vmatprep.subr.mxu1 %v3493_v51 }
 0x242   :  { %928 = vmatpush1.msra.mxu0 %v2578_v34  ;;  %2085 = vmatpush3.msra.mxu1 %v2695_v61 }
 0x243   :  { %929 = vmatprep.subr.mxu0 %v2581_v35  ;;  %2086 = vmatprep.subr.mxu1 %v3493_v51 }
 0x244   :  { %930 = vmatpush1.msra.mxu0 %v2589_v37  ;;  %2087 = vmatpush3.msra.mxu1 %v2701_v62 }
 0x245   :  { %931 = vmatprep.subr.mxu0 %v2598_v39  ;;  %2088 = vmatprep.subr.mxu1 %v3493_v51 }
 0x246   :  { %932 = vmatpush1.msra.mxu0 %v2601_v40  ;;  %2089 = vmatpush3.msra.mxu1 %v2708_v63 }
 0x247   :  { %933 = vmatprep.subr.mxu0 %v2604_v41  ;;  %2090 = vmatprep.subr.mxu1 %v3493_v51 }
 0x248   :  { %934 = vmatpush1.msra.mxu0 %v2609_v42  ;;  %2091 = vmatpush3.msra.mxu1 %v2714_v1 }
 0x249   :  { %935 = vmatprep.subr.mxu0 %v2616_v44  ;;  %2092 = vmatprep.subr.mxu1 %v3493_v51 }
 0x24a   :  { %936 = vmatpush1.msra.mxu0 %v2619_v45  ;;  %2093 = vmatpush3.msra.mxu1 %v2720_v2 }
 0x24b   :  { %937 = vmatprep.subr.mxu0 %v2623_v46  ;;  %2094 = vmatprep.subr.mxu1 %v3493_v51 }
 0x24c   :  { %938 = vmatpush1.msra.mxu0 %v2631_v48  ;;  %2095 = vmatpush3.msra.mxu1 %v3494_v43 }
 0x24d   :  { %939 = vmatprep.subr.mxu0 %v3495_v54  ;;  %2096 = vmatprep.subr.mxu1 %v3493_v51 }
 0x24e   :  { %940 = vmatpush1.msra.mxu0 %v3505_v38  ;;  %2097 = vmatpush3.msra.mxu1 %v3506_v5 }
 0x24f   :  { %941 = vmatprep.subr.mxu0 %v3507_v4  ;;  %2098 = vmatprep.subr.mxu1 %v3493_v51 }
 0x250   :  { %942 = vmatpush1.msra.mxu0 %v3508_v32  ;;  %975 = vmatprep.mubr.f32.mxu0 %v3493_v51 }
 0x251   :  { %2099 = vmatpush3.msra.mxu1 %v3509_v24  ;;  %2100 = vmatprep.mubr.msk.f32.mxu1 %vm2425_vm1, %v3493_v51 }
 0x252   :  { %1078 = vmatprep.subr.mxu0 %v3510_v26  ;;  %2103 = vmatprep.subr.mxu1 %v3493_v51 }
 0x2f1   :  { %v810_v52 = vpop.f32.mrf.mxu0  ;;  %v881_v3 = vpop.f32.mrf.mxu1 }
 0x2f2   :  { %v811_v36 = vadd.f32 %v810_v52, %v3511_v0  ;;  %v882_v5 = vadd.f32 %v881_v3, %v2857_v6  ;;  %v3110_v3 = vld [vmem:[#allocation3 + $0x150] sm:$0xff] }
 0x2f3   :  { %v2067_v50 = vpop.f32.mrf.mxu1  ;;  %v812_v30 = vpop.f32.mrf.mxu0 }
 0x2f4   :  { %v885_v20 = vadd.f32 %v811_v36, %v3512_v9  ;;  %v813_v49 = vadd.f32 %v812_v30, %v2844_v7  ;;  %v3514_v50 = vld [vmem:[#allocation34_spill] sm:$0xff] }
 0x2f6   :  { %v1783_v8 = vmul.f32 -1.442695, %v885_v20  ;;  %v892_v10 = vadd.f32 %v813_v49, %v3513_v14  ;;  %v3116_v14 = vld [vmem:[#allocation3 + $0x140] sm:$0xff] }
 0x2f8   :  { %2269 = vpow2.f32 %v1783_v8  ;;  %v1784_v24 = vmul.f32 -1.442695, %v892_v10  ;;  %v3120_v10 = vld [vmem:[#allocation3 + $0x138] sm:$0xff] }
 0x2fa   :  { %2271 = vpow2.f32 %v1784_v24  ;;  %v3106_v24 = vld [vmem:[#allocation3 + $0x158] sm:$0xff] }
 0x305   :  { %v2270_v32 = vpop.eup %2269 }
 0x306   :  { %v889_v4 = vadd.f32 1.0, %v2270_v32  ;;  %v3103_v32 = vld [vmem:[#allocation3 + $0x178] sm:$0xff] }
 0x307   :  { %v2272_v26 = vpop.eup %2271 }
 0x308   :  { %2273 = vrcp.f32 %v889_v4  ;;  %v896_v36 = vadd.f32 1.0, %v2272_v26  ;;  %v3100_v4 = vld [vmem:[#allocation3 + $0x168] sm:$0xff] }
 0x309   :  { %v3124_v26 = vld [vmem:[#allocation3 + $0x128] sm:$0xff] }
 0x315   :  { %v2274_v38 = vpop.eup %2273 }
 0x316   :  { %v899_v52 = vmul.f32 %v2274_v38, %v882_v5 }
 0x318   :  { %v900_v0 = vadd.f32 %v899_v52, %v3514_v50  ;;  %v3128_v52 = vld [vmem:[#allocation3 + $0x120] sm:$0xff]  ;;  %v3132_v50 = vld [vmem:[#allocation3 + $0x110] sm:$0xff] }
 0x31a   :  { %2275 = vtanh.f32 %v900_v0  ;;  %v3113_v0 = vld [vmem:[#allocation3 + $0x160] sm:$0xff] }
 0x31b   :  { %2277 = vrcp.f32 %v896_v36  ;;  %v3136_v36 = vld [vmem:[#allocation3 + $0x108] sm:$0xff] }
 0x327   :  { %v2276_v9 = vpop.eup %2275 }
 0x328   :  { %v902_v20 = vsub.f32 %v2938_v19, %v2276_v9  ;;  %v2278_v8 = vpop.eup %2277 }
 0x32a   :  { %v903_v30 = vmul.f32 %v2278_v8, %v902_v20  ;;  %v3152_v20 = vld [vmem:[#allocation3 + $0xd8] sm:$0xff]  ;;  %v3160_v8 = vld [vmem:[#allocation3 + $0xc0] sm:$0xff] }
 0x32c   :  { %v3016_v49 = vadd.f32 %v2276_v9, %v903_v30  ;;  %v3144_v9 = vld [vmem:[#allocation3 + $0xf0] sm:$0xff]  ;;  %v3168_v30 = vld [vmem:[#allocation3 + $0xa8] sm:$0xff] }
 0x32e   :  { %976 = vmatmul.mubr.f32.vlgmr.msra.gmra.mxu0 %v3016_v49  ;;  %2101 = vmatmul.mubr.f32.vlgmr.msra.gmra.mxu1 %v3016_v49 }
 0x32f   :  { %1079 = vmatpush1.msra.mxu0 %v2491_v11  ;;  %2104 = vmatpush3.msra.mxu1 %v2627_v47  ;;  %v3515_v11 = vld [vmem:[#allocation11_spill] sm:$0xff] }
 0x330   :  { %1080 = vmatprep.subr.mxu0 %v2493_v12  ;;  %2105 = vmatprep.subr.mxu1 %v3493_v51  ;;  %v3516_v12 = vld [vmem:[#allocation15_spill] sm:$0xff] }
 0x331   :  { %1081 = vmatpush1.msra.mxu0 %v2497_v13  ;;  %2106 = vmatpush3.msra.mxu1 %v2648_v53  ;;  %v3517_v13 = vld [vmem:[#allocation12_spill] sm:$0xff] }
 0x332   :  { %1082 = vmatprep.subr.mxu0 %v2506_v15  ;;  %2107 = vmatprep.subr.mxu1 %v3493_v51  ;;  %v3518_v15 = vld [vmem:[#allocation13_spill] sm:$0xff] }
 0x333   :  { %1083 = vmatpush1.msra.mxu0 %v2509_v16  ;;  %2108 = vmatpush3.msra.mxu1 %v2656_v55  ;;  %v3519_v16 = vld [vmem:[#allocation16_spill] sm:$0xff] }
 0x334   :  { %1084 = vmatprep.subr.mxu0 %v2512_v17  ;;  %2109 = vmatprep.subr.mxu1 %v3493_v51  ;;  %v3085_v17 = vld [vmem:[#allocation3 + $0x170] sm:$0xff] }
 0x335   :  { %1085 = vmatpush1.msra.mxu0 %v2517_v18  ;;  %2110 = vmatpush3.msra.mxu1 %v2662_v56 }
 0x336   :  { %1086 = vmatprep.subr.mxu0 %v2529_v21  ;;  %2111 = vmatprep.subr.mxu1 %v3493_v51 }
 0x337   :  { %1087 = vmatpush1.msra.mxu0 %v2532_v22  ;;  %2112 = vmatpush3.msra.mxu1 %v2667_v57  ;;  %v3520_v22 = vld [vmem:[#allocation31_spill] sm:$0xff] }
 0x338   :  { %1088 = vmatprep.subr.mxu0 %v2535_v23  ;;  %2113 = vmatprep.subr.mxu1 %v3493_v51 }
 0x339   :  { %1089 = vmatpush1.msra.mxu0 %v2543_v25  ;;  %2114 = vmatpush3.msra.mxu1 %v2674_v58 }
 0x33a   :  { %1090 = vmatprep.subr.mxu0 %v2552_v27  ;;  %2115 = vmatprep.subr.mxu1 %v3493_v51  ;;  %v3521_v27 = vld [vmem:[#allocation21_spill] sm:$0xff] }
 0x33b   :  { %1091 = vmatpush1.msra.mxu0 %v2555_v28  ;;  %2116 = vmatpush3.msra.mxu1 %v2682_v59 }
 0x33c   :  { %1092 = vmatprep.subr.mxu0 %v2558_v29  ;;  %2117 = vmatprep.subr.mxu1 %v3493_v51 }
 0x33d   :  { %1093 = vmatpush1.msra.mxu0 %v2566_v31  ;;  %2118 = vmatpush3.msra.mxu1 %v2688_v60 }
 0x33e   :  { %1094 = vmatprep.subr.mxu0 %v2575_v33  ;;  %2119 = vmatprep.subr.mxu1 %v3493_v51 }
 0x33f   :  { %1095 = vmatpush1.msra.mxu0 %v2578_v34  ;;  %2120 = vmatpush3.msra.mxu1 %v2695_v61  ;;  %v3522_v34 = vld [vmem:[#allocation22_spill] sm:$0xff] }
 0x340   :  { %1096 = vmatprep.subr.mxu0 %v2581_v35  ;;  %2121 = vmatprep.subr.mxu1 %v3493_v51 }
 0x341   :  { %1097 = vmatpush1.msra.mxu0 %v2589_v37  ;;  %2122 = vmatpush3.msra.mxu1 %v2701_v62 }
 0x342   :  { %1098 = vmatprep.subr.mxu0 %v2598_v39  ;;  %2123 = vmatprep.subr.mxu1 %v3493_v51 }
 0x343   :  { %1099 = vmatpush1.msra.mxu0 %v2601_v40  ;;  %2124 = vmatpush3.msra.mxu1 %v2708_v63 }
 0x344   :  { %1100 = vmatprep.subr.mxu0 %v2604_v41  ;;  %2125 = vmatprep.subr.mxu1 %v3493_v51 }
 0x345   :  { %1101 = vmatpush1.msra.mxu0 %v2609_v42  ;;  %2126 = vmatpush3.msra.mxu1 %v2714_v1 }
 0x346   :  { %1102 = vmatprep.subr.mxu0 %v2616_v44  ;;  %2127 = vmatprep.subr.mxu1 %v3493_v51 }
 0x347   :  { %1103 = vmatpush1.msra.mxu0 %v2619_v45  ;;  %2128 = vmatpush3.msra.mxu1 %v2720_v2 }
 0x348   :  { %1104 = vmatprep.subr.mxu0 %v2623_v46  ;;  %2129 = vmatprep.subr.mxu1 %v3493_v51  ;;  %v3523_v46 = vld [vmem:[#allocation33_spill] sm:$0xff] }
 0x349   :  { %1105 = vmatpush1.msra.mxu0 %v2631_v48  ;;  %2130 = vmatpush3.msra.mxu1 %v3494_v43 }
 0x34a   :  { %1106 = vmatprep.subr.mxu0 %v3495_v54  ;;  %2131 = vmatprep.subr.mxu1 %v3493_v51 }
 0x34b   :  { %1107 = vmatpush1.msra.mxu0 %v3515_v11  ;;  %2132 = vmatpush3.msra.mxu1 %v3516_v12  ;;  %v3184_v11 = vld [vmem:[#allocation3 + $0x78] sm:$0xff] }
 0x34c   :  { %1108 = vmatprep.subr.mxu0 %v3517_v13  ;;  %2133 = vmatprep.subr.mxu1 %v3493_v51  ;;  %v3192_v13 = vld [vmem:[#allocation3 + $0x60] sm:$0xff] }
 0x34d   :  { %1109 = vmatpush1.msra.mxu0 %v3518_v15  ;;  %1142 = vmatprep.mubr.f32.mxu0 %v3493_v51  ;;  %v3200_v15 = vld [vmem:[#allocation3 + $0x48] sm:$0xff] }
 0x34e   :  { %2134 = vmatpush3.msra.mxu1 %v3519_v16  ;;  %2135 = vmatprep.mubr.msk.f32.mxu1 %vm2425_vm1, %v3493_v51 }
 0x34f   :  { %1245 = vmatprep.subr.mxu0 %v3085_v17  ;;  %2138 = vmatprep.subr.mxu1 %v3493_v51 }
 0x3ee   :  { %v977_v18 = vpop.f32.mrf.mxu0  ;;  %v1048_v21 = vpop.f32.mrf.mxu1 }
 0x3ef   :  { %v978_v23 = vadd.f32 %v977_v18, %v3520_v22  ;;  %v1049_v42 = vadd.f32 %v1048_v21, %v2857_v6  ;;  %v3208_v18 = vld [vmem:[#allocation3 + $0x30] sm:$0xff]  ;;  %v3216_v21 = vld [vmem:[#allocation3 + $0x18] sm:$0xff] }
 0x3f0   :  { %v2102_v25 = vpop.f32.mrf.mxu1  ;;  %v979_v31 = vpop.f32.mrf.mxu0  ;;  %3524 = vst [vmem:[#allocation14_spill] sm:$0xff] %v3216_v21 }
 0x3f1   :  { %v1052_v28 = vadd.f32 %v978_v23, %v3521_v27  ;;  %v980_v33 = vadd.f32 %v979_v31, %v2844_v7  ;;  %v3224_v23 = vld [vmem:[#allocation3] sm:$0xff] }
 0x3f2   :  { %3526 = vst [vmem:[#allocation17_spill] sm:$0xff] %v3224_v23 }
 0x3f3   :  { %v1785_v29 = vmul.f32 -1.442695, %v1052_v28  ;;  %v1059_v35 = vadd.f32 %v980_v33, %v3522_v34  ;;  %v3527_v28 = vld [vmem:[#allocation23_spill] sm:$0xff] }
 0x3f5   :  { %2279 = vpow2.f32 %v1785_v29  ;;  %v1786_v37 = vmul.f32 -1.442695, %v1059_v35 }
 0x3f7   :  { %2281 = vpow2.f32 %v1786_v37 }
 0x402   :  { %v2280_v39 = vpop.eup %2279 }
 0x403   :  { %v1056_v40 = vadd.f32 1.0, %v2280_v39 }
 0x404   :  { %v2282_v41 = vpop.eup %2281 }
 0x405   :  { %2283 = vrcp.f32 %v1056_v40  ;;  %v1063_v48 = vadd.f32 1.0, %v2282_v41 }
 0x412   :  { %v2284_v44 = vpop.eup %2283 }
 0x413   :  { %v1066_v45 = vmul.f32 %v2284_v44, %v1049_v42 }
 0x415   :  { %v1067_v47 = vadd.f32 %v1066_v45, %v3523_v46  ;;  %v3529_v46 = vld [vmem:[#allocation36_spill] sm:$0xff] }
 0x417   :  { %2285 = vtanh.f32 %v1067_v47 }
 0x418   :  { %2287 = vrcp.f32 %v1063_v48 }
 0x424   :  { %v2286_v53 = vpop.eup %2285 }
 0x425   :  { %v1069_v54 = vsub.f32 %v3016_v49, %v2286_v53  ;;  %v2288_v19 = vpop.eup %2287  ;;  %v3176_v49 = vld [vmem:[#allocation3 + $0x90] sm:$0xff] }
 0x427   :  { %v1070_v38 = vmul.f32 %v2288_v19, %v1069_v54 }
 0x429   :  { %v3096_v5 = vadd.f32 %v2286_v53, %v1070_v38 }
 0x42b   :  { %1143 = vmatmul.mubr.f32.vlgmr.msra.gmra.mxu0 %v3096_v5  ;;  %2136 = vmatmul.mubr.f32.vlgmr.msra.gmra.mxu1 %v3096_v5 }
 0x42c   :  { %1246 = vmatpush1.msra.mxu0 %v3100_v4  ;;  %2139 = vmatpush3.msra.mxu1 %v3103_v32 }
 0x42d   :  { %1247 = vmatprep.subr.mxu0 %v3106_v24  ;;  %2140 = vmatprep.subr.mxu1 %v3493_v51 }
 0x42e   :  { %1248 = vmatpush1.msra.mxu0 %v3110_v3  ;;  %2141 = vmatpush3.msra.mxu1 %v3113_v0 }
 0x42f   :  { %1249 = vmatprep.subr.mxu0 %v3116_v14  ;;  %2142 = vmatprep.subr.mxu1 %v3493_v51 }
 0x430   :  { %1250 = vmatpush1.msra.mxu0 %v3120_v10  ;;  %2143 = vmatpush3.msra.mxu1 %v2656_v55  ;;  %v3140_v55 = vld [vmem:[#allocation3 + $0xf8] sm:$0xff] }
 0x431   :  { %1251 = vmatprep.subr.mxu0 %v3124_v26  ;;  %2144 = vmatprep.subr.mxu1 %v3493_v51 }
 0x432   :  { %1252 = vmatpush1.msra.mxu0 %v3128_v52  ;;  %2145 = vmatpush3.msra.mxu1 %v2662_v56  ;;  %v3148_v56 = vld [vmem:[#allocation3 + $0xe0] sm:$0xff] }
 0x433   :  { %1253 = vmatprep.subr.mxu0 %v3132_v50  ;;  %2146 = vmatprep.subr.mxu1 %v3493_v51 }
 0x434   :  { %1254 = vmatpush1.msra.mxu0 %v3136_v36  ;;  %2147 = vmatpush3.msra.mxu1 %v2667_v57  ;;  %v3156_v57 = vld [vmem:[#allocation3 + $0xc8] sm:$0xff] }
 0x435   :  { %1255 = vmatprep.subr.mxu0 %v3140_v55  ;;  %2148 = vmatprep.subr.mxu1 %v3493_v51 }
 0x436   :  { %1256 = vmatpush1.msra.mxu0 %v3144_v9  ;;  %2149 = vmatpush3.msra.mxu1 %v2674_v58  ;;  %v3164_v58 = vld [vmem:[#allocation3 + $0xb0] sm:$0xff] }
 0x437   :  { %1257 = vmatprep.subr.mxu0 %v3148_v56  ;;  %2150 = vmatprep.subr.mxu1 %v3493_v51 }
 0x438   :  { %1258 = vmatpush1.msra.mxu0 %v3152_v20  ;;  %2151 = vmatpush3.msra.mxu1 %v2682_v59  ;;  %v3172_v59 = vld [vmem:[#allocation3 + $0x98] sm:$0xff] }
 0x439   :  { %1259 = vmatprep.subr.mxu0 %v3156_v57  ;;  %2152 = vmatprep.subr.mxu1 %v3493_v51 }
 0x43a   :  { %1260 = vmatpush1.msra.mxu0 %v3160_v8  ;;  %2153 = vmatpush3.msra.mxu1 %v2688_v60  ;;  %v3180_v60 = vld [vmem:[#allocation3 + $0x80] sm:$0xff] }
 0x43b   :  { %1261 = vmatprep.subr.mxu0 %v3164_v58  ;;  %2154 = vmatprep.subr.mxu1 %v3493_v51 }
 0x43c   :  { %1262 = vmatpush1.msra.mxu0 %v3168_v30  ;;  %2155 = vmatpush3.msra.mxu1 %v2695_v61  ;;  %v3188_v61 = vld [vmem:[#allocation3 + $0x68] sm:$0xff] }
 0x43d   :  { %1263 = vmatprep.subr.mxu0 %v3172_v59  ;;  %2156 = vmatprep.subr.mxu1 %v3493_v51 }
 0x43e   :  { %1264 = vmatpush1.msra.mxu0 %v3176_v49  ;;  %2157 = vmatpush3.msra.mxu1 %v2701_v62  ;;  %v3196_v62 = vld [vmem:[#allocation3 + $0x50] sm:$0xff] }
 0x43f   :  { %1265 = vmatprep.subr.mxu0 %v3180_v60  ;;  %2158 = vmatprep.subr.mxu1 %v3493_v51 }
 0x440   :  { %1266 = vmatpush1.msra.mxu0 %v3184_v11  ;;  %2159 = vmatpush3.msra.mxu1 %v2708_v63  ;;  %v3204_v63 = vld [vmem:[#allocation3 + $0x38] sm:$0xff] }
 0x441   :  { %1267 = vmatprep.subr.mxu0 %v3188_v61  ;;  %2160 = vmatprep.subr.mxu1 %v3493_v51 }
 0x442   :  { %1268 = vmatpush1.msra.mxu0 %v3192_v13  ;;  %2161 = vmatpush3.msra.mxu1 %v2714_v1  ;;  %v3212_v1 = vld [vmem:[#allocation3 + $0x20] sm:$0xff] }
 0x443   :  { %1269 = vmatprep.subr.mxu0 %v3196_v62  ;;  %2162 = vmatprep.subr.mxu1 %v3493_v51 }
 0x444   :  { %1270 = vmatpush1.msra.mxu0 %v3200_v15  ;;  %2163 = vmatpush3.msra.mxu1 %v2720_v2  ;;  %v3220_v2 = vld [vmem:[#allocation3 + $0x8] sm:$0xff] }
 0x445   :  { %1271 = vmatprep.subr.mxu0 %v3204_v63  ;;  %2164 = vmatprep.subr.mxu1 %v3493_v51  ;;  %3525 = vst [vmem:[#allocation10_spill] sm:$0xff] %v3220_v2 }
 0x446   :  { %1272 = vmatpush1.msra.mxu0 %v3208_v18  ;;  %2165 = vmatpush3.msra.mxu1 %v3494_v43 }
 0x447   :  { %1273 = vmatprep.subr.mxu0 %v3212_v1  ;;  %2166 = vmatprep.subr.mxu1 %v3493_v51 }
 0x448   :  { %1274 = vmatpush1.msra.mxu0 %v3216_v21  ;;  %2167 = vmatpush3.msra.mxu1 %v3516_v12 }
 0x449   :  { %1275 = vmatprep.subr.mxu0 %v3220_v2  ;;  %2168 = vmatprep.subr.mxu1 %v3493_v51 }
 0x44a   :  { %1276 = vmatpush1.msra.mxu0 %v3224_v23  ;;  %1309 = vmatprep.mubr.f32.mxu0 %v3493_v51 }
 0x44b   :  { %2169 = vmatpush3.msra.mxu1 %v3519_v16  ;;  %2170 = vmatprep.mubr.msk.f32.mxu1 %vm2425_vm1, %v3493_v51  ;;  %v3528_v16 = vld [vmem:[#allocation24_spill] sm:$0xff] }
 0x44c   :  { %1412 = vmatprep.subr.mxu0 %v3085_v17  ;;  %2173 = vmatprep.subr.mxu1 %v3493_v51 }
 0x4eb   :  { %v1144_v43 = vpop.f32.mrf.mxu0  ;;  %v1215_v12 = vpop.f32.mrf.mxu1 }
 0x4ec   :  { %v1145_v25 = vadd.f32 %v1144_v43, %v3520_v22  ;;  %v1216_v42 = vadd.f32 %v1215_v12, %v2857_v6  ;;  %v3259_v12 = vld [vmem:[#allocation3 + $0x130] sm:$0xff] }
 0x4ed   :  { %v2137_v27 = vpop.f32.mrf.mxu1  ;;  %v1146_v33 = vpop.f32.mrf.mxu0 }
 0x4ee   :  { %v1219_v29 = vadd.f32 %v1145_v25, %v3527_v28  ;;  %v1147_v34 = vadd.f32 %v1146_v33, %v2844_v7  ;;  %v3265_v25 = vld [vmem:[#allocation3 + $0x118] sm:$0xff]  ;;  %v3271_v27 = vld [vmem:[#allocation3 + $0x100] sm:$0xff]  ;;  %v3277_v28 = vld [vmem:[#allocation3 + $0xe8] sm:$0xff] }
 0x4ef   :  { %v3295_v33 = vld [vmem:[#allocation3 + $0xa0] sm:$0xff] }
 0x4f0   :  { %v1787_v31 = vmul.f32 -1.442695, %v1219_v29  ;;  %v1226_v35 = vadd.f32 %v1147_v34, %v3528_v16  ;;  %v3283_v29 = vld [vmem:[#allocation3 + $0xd0] sm:$0xff]  ;;  %v3301_v34 = vld [vmem:[#allocation3 + $0x88] sm:$0xff] }
 0x4f1   :  { %v3307_v16 = vld [vmem:[#allocation3 + $0x70] sm:$0xff] }
 0x4f2   :  { %2289 = vpow2.f32 %v1787_v31  ;;  %v1788_v37 = vmul.f32 -1.442695, %v1226_v35  ;;  %v3289_v31 = vld [vmem:[#allocation3 + $0xb8] sm:$0xff] }
 0x4f3   :  { %v3313_v35 = vld [vmem:[#allocation3 + $0x58] sm:$0xff] }
 0x4f4   :  { %2291 = vpow2.f32 %v1788_v37  ;;  %v3319_v37 = vld [vmem:[#allocation3 + $0x40] sm:$0xff] }
 0x4ff   :  { %v2290_v39 = vpop.eup %2289 }
 0x500   :  { %v1223_v40 = vadd.f32 1.0, %v2290_v39  ;;  %v3325_v39 = vld [vmem:[#allocation3 + $0x28] sm:$0xff] }
 0x501   :  { %v2292_v41 = vpop.eup %2291  ;;  %3530 = vst [vmem:[#allocation18_spill] sm:$0xff] %v3325_v39 }
 0x502   :  { %2293 = vrcp.f32 %v1223_v40  ;;  %v1230_v48 = vadd.f32 1.0, %v2292_v41  ;;  %v3332_v40 = vld [vmem:[#allocation3 + $0x10] sm:$0xff] }
 0x503   :  { %3531 = vst [vmem:[#allocation27_spill] sm:$0xff] %v3332_v40 }
 0x50f   :  { %v2294_v44 = vpop.eup %2293 }
 0x510   :  { %v1233_v45 = vmul.f32 %v2294_v44, %v1216_v42 }
 0x512   :  { %v1234_v47 = vadd.f32 %v1233_v45, %v3529_v46  ;;  %v3532_v46 = vld [vmem:[#allocation25_spill] sm:$0xff] }
 0x514   :  { %2295 = vtanh.f32 %v1234_v47 }
 0x515   :  { %2297 = vrcp.f32 %v1230_v48 }
 0x521   :  { %v2296_v53 = vpop.eup %2295 }
 0x522   :  { %v1236_v54 = vsub.f32 %v3096_v5, %v2296_v53  ;;  %v2298_v19 = vpop.eup %2297  ;;  %v3253_v5 = vld [vmem:[#allocation3 + $0x148] sm:$0xff] }
 0x524   :  { %v1237_v38 = vmul.f32 %v2298_v19, %v1236_v54  ;;  %v3533_v19 = vld [vmem:[#allocation26_spill] sm:$0xff] }
 0x526   :  { %v3240_v43 = vadd.f32 %v2296_v53, %v1237_v38 }
 0x528   :  { %1310 = vmatmul.mubr.f32.vlgmr.msra.gmra.mxu0 %v3240_v43  ;;  %2171 = vmatmul.mubr.f32.vlgmr.msra.gmra.mxu1 %v3240_v43 }
 0x529   :  { %1413 = vmatpush1.msra.mxu0 %v3100_v4  ;;  %2174 = vmatpush3.msra.mxu1 %v3103_v32 }
 0x52a   :  { %1414 = vmatprep.subr.mxu0 %v3106_v24  ;;  %2175 = vmatprep.subr.mxu1 %v3493_v51 }
 0x52b   :  { %1415 = vmatpush1.msra.mxu0 %v3110_v3  ;;  %2176 = vmatpush3.msra.mxu1 %v3113_v0 }
 0x52c   :  { %1416 = vmatprep.subr.mxu0 %v3116_v14  ;;  %2177 = vmatprep.subr.mxu1 %v3493_v51 }
 0x52d   :  { %1417 = vmatpush1.msra.mxu0 %v3120_v10  ;;  %2178 = vmatpush3.msra.mxu1 %v3253_v5 }
 0x52e   :  { %1418 = vmatprep.subr.mxu0 %v3124_v26  ;;  %2179 = vmatprep.subr.mxu1 %v3493_v51 }
 0x52f   :  { %1419 = vmatpush1.msra.mxu0 %v3128_v52  ;;  %2180 = vmatpush3.msra.mxu1 %v3259_v12 }
 0x530   :  { %1420 = vmatprep.subr.mxu0 %v3132_v50  ;;  %2181 = vmatprep.subr.mxu1 %v3493_v51 }
 0x531   :  { %1421 = vmatpush1.msra.mxu0 %v3136_v36  ;;  %2182 = vmatpush3.msra.mxu1 %v3265_v25 }
 0x532   :  { %1422 = vmatprep.subr.mxu0 %v3140_v55  ;;  %2183 = vmatprep.subr.mxu1 %v3493_v51 }
 0x533   :  { %1423 = vmatpush1.msra.mxu0 %v3144_v9  ;;  %2184 = vmatpush3.msra.mxu1 %v3271_v27 }
 0x534   :  { %1424 = vmatprep.subr.mxu0 %v3148_v56  ;;  %2185 = vmatprep.subr.mxu1 %v3493_v51 }
 0x535   :  { %1425 = vmatpush1.msra.mxu0 %v3152_v20  ;;  %2186 = vmatpush3.msra.mxu1 %v3277_v28 }
 0x536   :  { %1426 = vmatprep.subr.mxu0 %v3156_v57  ;;  %2187 = vmatprep.subr.mxu1 %v3493_v51 }
 0x537   :  { %1427 = vmatpush1.msra.mxu0 %v3160_v8  ;;  %2188 = vmatpush3.msra.mxu1 %v3283_v29 }
 0x538   :  { %1428 = vmatprep.subr.mxu0 %v3164_v58  ;;  %2189 = vmatprep.subr.mxu1 %v3493_v51 }
 0x539   :  { %1429 = vmatpush1.msra.mxu0 %v3168_v30  ;;  %2190 = vmatpush3.msra.mxu1 %v3289_v31 }
 0x53a   :  { %1430 = vmatprep.subr.mxu0 %v3172_v59  ;;  %2191 = vmatprep.subr.mxu1 %v3493_v51 }
 0x53b   :  { %1431 = vmatpush1.msra.mxu0 %v3176_v49  ;;  %2192 = vmatpush3.msra.mxu1 %v3295_v33 }
 0x53c   :  { %1432 = vmatprep.subr.mxu0 %v3180_v60  ;;  %2193 = vmatprep.subr.mxu1 %v3493_v51 }
 0x53d   :  { %1433 = vmatpush1.msra.mxu0 %v3184_v11  ;;  %2194 = vmatpush3.msra.mxu1 %v3301_v34 }
 0x53e   :  { %1434 = vmatprep.subr.mxu0 %v3188_v61  ;;  %2195 = vmatprep.subr.mxu1 %v3493_v51 }
 0x53f   :  { %1435 = vmatpush1.msra.mxu0 %v3192_v13  ;;  %2196 = vmatpush3.msra.mxu1 %v3307_v16 }
 0x540   :  { %1436 = vmatprep.subr.mxu0 %v3196_v62  ;;  %2197 = vmatprep.subr.mxu1 %v3493_v51 }
 0x541   :  { %1437 = vmatpush1.msra.mxu0 %v3200_v15  ;;  %2198 = vmatpush3.msra.mxu1 %v3313_v35 }
 0x542   :  { %1438 = vmatprep.subr.mxu0 %v3204_v63  ;;  %2199 = vmatprep.subr.mxu1 %v3493_v51 }
 0x543   :  { %1439 = vmatpush1.msra.mxu0 %v3208_v18  ;;  %2200 = vmatpush3.msra.mxu1 %v3319_v37 }
 0x544   :  { %1440 = vmatprep.subr.mxu0 %v3212_v1  ;;  %2201 = vmatprep.subr.mxu1 %v3493_v51 }
 0x545   :  { %1441 = vmatpush1.msra.mxu0 %v3216_v21  ;;  %2202 = vmatpush3.msra.mxu1 %v3325_v39 }
 0x546   :  { %1442 = vmatprep.subr.mxu0 %v3220_v2  ;;  %2203 = vmatprep.subr.mxu1 %v3493_v51 }
 0x547   :  { %1443 = vmatpush1.msra.mxu0 %v3224_v23  ;;  %1476 = vmatprep.mubr.f32.mxu0 %v3493_v51 }
 0x548   :  { %2204 = vmatpush3.msra.mxu1 %v3332_v40  ;;  %2205 = vmatprep.mubr.msk.f32.mxu1 %vm2425_vm1, %v3493_v51 }
 0x549   :  { %1579 = vmatprep.subr.mxu0 %v3085_v17  ;;  %2208 = vmatprep.subr.mxu1 %v3493_v51 }
 0x5e8   :  { %v1311_v41 = vpop.f32.mrf.mxu0  ;;  %v1382_v42 = vpop.f32.mrf.mxu1 }
 0x5e9   :  { %v1312_v44 = vadd.f32 %v1311_v41, %v3520_v22  ;;  %v1383_v39 = vadd.f32 %v1382_v42, %v2857_v6  ;;  %v3546_v42 = vld [vmem:[#allocation37_spill] sm:$0xff] }
 0x5ea   :  { %v2172_v45 = vpop.f32.mrf.mxu1  ;;  %v1313_v53 = vpop.f32.mrf.mxu0 }
 0x5eb   :  { %v1386_v47 = vadd.f32 %v1312_v44, %v3532_v46  ;;  %v1314_v54 = vadd.f32 %v1313_v53, %v2844_v7  ;;  %v3534_v45 = vld [vmem:[#allocation35_spill] sm:$0xff] }
 0x5ed   :  { %v1789_v48 = vmul.f32 -1.442695, %v1386_v47  ;;  %v1393_v38 = vadd.f32 %v1314_v54, %v3533_v19 }
 0x5ef   :  { %2299 = vpow2.f32 %v1789_v48  ;;  %v1790_v40 = vmul.f32 -1.442695, %v1393_v38 }
 0x5f1   :  { %2301 = vpow2.f32 %v1790_v40 }
 0x5fc   :  { %v2300_v23 = vpop.eup %2299 }
 0x5fd   :  { %v1390_v2 = vadd.f32 1.0, %v2300_v23 }
 0x5fe   :  { %v2302_v17 = vpop.eup %2301 }
 0x5ff   :  { %2303 = vrcp.f32 %v1390_v2  ;;  %v1397_v44 = vadd.f32 1.0, %v2302_v17 }
 0x60c   :  { %v2304_v21 = vpop.eup %2303 }
 0x60d   :  { %v1400_v41 = vmul.f32 %v2304_v21, %v1383_v39 }
 0x60f   :  { %v1401_v22 = vadd.f32 %v1400_v41, %v3534_v45 }
 0x611   :  { %2305 = vtanh.f32 %v1401_v22  ;;  %v3535_v22 = vld [vmem:[#allocation14_spill] sm:$0xff] }
 0x612   :  { %2307 = vrcp.f32 %v1397_v44 }
 0x61e   :  { %v2306_v46 = vpop.eup %2305 }
 0x61f   :  { %v1403_v47 = vsub.f32 %v3240_v43, %v2306_v46  ;;  %v2308_v48 = vpop.eup %2307 }
 0x621   :  { %v1404_v53 = vmul.f32 %v2308_v48, %v1403_v47 }
 0x623   :  { %v3346_v54 = vadd.f32 %v2306_v46, %v1404_v53 }
 0x625   :  { %1477 = vmatmul.mubr.f32.vlgmr.msra.gmra.mxu0 %v3346_v54  ;;  %2206 = vmatmul.mubr.f32.vlgmr.msra.gmra.mxu1 %v3346_v54 }
 0x626   :  { %1580 = vmatpush1.msra.mxu0 %v3100_v4  ;;  %2209 = vmatpush3.msra.mxu1 %v3103_v32  ;;  %v3536_v4 = vld [vmem:[#allocation18_spill] sm:$0xff] }
 0x627   :  { %1581 = vmatprep.subr.mxu0 %v3106_v24  ;;  %2210 = vmatprep.subr.mxu1 %v3493_v51  ;;  %v3537_v32 = vld [vmem:[#allocation10_spill] sm:$0xff]  ;;  %v3538_v24 = vld [vmem:[#allocation17_spill] sm:$0xff] }
 0x628   :  { %1582 = vmatpush1.msra.mxu0 %v3110_v3  ;;  %2211 = vmatpush3.msra.mxu1 %v3113_v0  ;;  %v3539_v3 = vld [vmem:[#allocation27_spill] sm:$0xff] }
 0x629   :  { %1583 = vmatprep.subr.mxu0 %v3116_v14  ;;  %2212 = vmatprep.subr.mxu1 %v3493_v51 }
 0x62a   :  { %1584 = vmatpush1.msra.mxu0 %v3120_v10  ;;  %2213 = vmatpush3.msra.mxu1 %v3253_v5  ;;  %v3540_v10 = vld [vmem:[#allocation31_spill] sm:$0xff]  ;;  %v3544_v5 = vld [vmem:[#allocation30_spill] sm:$0xff] }
 0x62b   :  { %1585 = vmatprep.subr.mxu0 %v3124_v26  ;;  %2214 = vmatprep.subr.mxu1 %v3493_v51 }
 0x62c   :  { %1586 = vmatpush1.msra.mxu0 %v3128_v52  ;;  %2215 = vmatpush3.msra.mxu1 %v3259_v12 }
 0x62d   :  { %1587 = vmatprep.subr.mxu0 %v3132_v50  ;;  %2216 = vmatprep.subr.mxu1 %v3493_v51  ;;  %v3541_v50 = vld [vmem:[#allocation28_spill] sm:$0xff] }
 0x62e   :  { %1588 = vmatpush1.msra.mxu0 %v3136_v36  ;;  %2217 = vmatpush3.msra.mxu1 %v3265_v25 }
 0x62f   :  { %1589 = vmatprep.subr.mxu0 %v3140_v55  ;;  %2218 = vmatprep.subr.mxu1 %v3493_v51 }
 0x630   :  { %1590 = vmatpush1.msra.mxu0 %v3144_v9  ;;  %2219 = vmatpush3.msra.mxu1 %v3271_v27 }
 0x631   :  { %1591 = vmatprep.subr.mxu0 %v3148_v56  ;;  %2220 = vmatprep.subr.mxu1 %v3493_v51 }
 0x632   :  { %1592 = vmatpush1.msra.mxu0 %v3152_v20  ;;  %2221 = vmatpush3.msra.mxu1 %v3277_v28  ;;  %v3542_v20 = vld [vmem:[#allocation29_spill] sm:$0xff] }
 0x633   :  { %1593 = vmatprep.subr.mxu0 %v3156_v57  ;;  %2222 = vmatprep.subr.mxu1 %v3493_v51 }
 0x634   :  { %1594 = vmatpush1.msra.mxu0 %v3160_v8  ;;  %2223 = vmatpush3.msra.mxu1 %v3283_v29  ;;  %v3545_v29 = vld [vmem:[#allocation32_spill] sm:$0xff] }
 0x635   :  { %1595 = vmatprep.subr.mxu0 %v3164_v58  ;;  %2224 = vmatprep.subr.mxu1 %v3493_v51 }
 0x636   :  { %1596 = vmatpush1.msra.mxu0 %v3168_v30  ;;  %2225 = vmatpush3.msra.mxu1 %v3289_v31 }
 0x637   :  { %1597 = vmatprep.subr.mxu0 %v3172_v59  ;;  %2226 = vmatprep.subr.mxu1 %v3493_v51 }
 0x638   :  { %1598 = vmatpush1.msra.mxu0 %v3176_v49  ;;  %2227 = vmatpush3.msra.mxu1 %v3295_v33 }
 0x639   :  { %1599 = vmatprep.subr.mxu0 %v3180_v60  ;;  %2228 = vmatprep.subr.mxu1 %v3493_v51 }
 0x63a   :  { %1600 = vmatpush1.msra.mxu0 %v3184_v11  ;;  %2229 = vmatpush3.msra.mxu1 %v3301_v34  ;;  %v3543_v11 = vld [vmem:[#allocation38_spill] sm:$0xff] }
 0x63b   :  { %1601 = vmatprep.subr.mxu0 %v3188_v61  ;;  %2230 = vmatprep.subr.mxu1 %v3493_v51 }
 0x63c   :  { %1602 = vmatpush1.msra.mxu0 %v3192_v13  ;;  %2231 = vmatpush3.msra.mxu1 %v3307_v16 }
 0x63d   :  { %1603 = vmatprep.subr.mxu0 %v3196_v62  ;;  %2232 = vmatprep.subr.mxu1 %v3493_v51 }
 0x63e   :  { %1604 = vmatpush1.msra.mxu0 %v3200_v15  ;;  %2233 = vmatpush3.msra.mxu1 %v3313_v35 }
 0x63f   :  { %1605 = vmatprep.subr.mxu0 %v3204_v63  ;;  %2234 = vmatprep.subr.mxu1 %v3493_v51 }
 0x640   :  { %1606 = vmatpush1.msra.mxu0 %v3208_v18  ;;  %2235 = vmatpush3.msra.mxu1 %v3319_v37 }
 0x641   :  { %1607 = vmatprep.subr.mxu0 %v3212_v1  ;;  %2236 = vmatprep.subr.mxu1 %v3493_v51 }
 0x642   :  { %1608 = vmatpush1.msra.mxu0 %v3535_v22  ;;  %2237 = vmatpush3.msra.mxu1 %v3536_v4 }
 0x643   :  { %1609 = vmatprep.subr.mxu0 %v3537_v32  ;;  %2238 = vmatprep.subr.mxu1 %v3493_v51 }
 0x644   :  { %1610 = vmatpush1.msra.mxu0 %v3538_v24  ;;  %1643 = vmatprep.mubr.f32.mxu0 %v3493_v51 }
 0x645   :  { %2239 = vmatpush3.msra.mxu1 %v3539_v3  ;;  %2240 = vmatprep.mubr.msk.f32.mxu1 %vm2425_vm1, %v3493_v51 }
 0x6e5   :  { %v1478_v0 = vpop.f32.mrf.mxu0  ;;  %v1549_v14 = vpop.f32.mrf.mxu1 }
 0x6e6   :  { %v1479_v26 = vadd.f32 %v1478_v0, %v3540_v10  ;;  %v1550_v59 = vadd.f32 %v1549_v14, %v2857_v6 }
 0x6e7   :  { %v2207_v52 = vpop.f32.mrf.mxu1  ;;  %v1480_v9 = vpop.f32.mrf.mxu0 }
 0x6e8   :  { %v1553_v36 = vadd.f32 %v1479_v26, %v3541_v50  ;;  %v1481_v56 = vadd.f32 %v1480_v9, %v2844_v7 }
 0x6ea   :  { %v1791_v55 = vmul.f32 -1.442695, %v1553_v36  ;;  %v1560_v57 = vadd.f32 %v1481_v56, %v3542_v20 }
 0x6ec   :  { %2309 = vpow2.f32 %v1791_v55  ;;  %v1792_v8 = vmul.f32 -1.442695, %v1560_v57 }
 0x6ee   :  { %2311 = vpow2.f32 %v1792_v8 }
 0x6f9   :  { %v2310_v58 = vpop.eup %2309 }
 0x6fa   :  { %v1557_v30 = vadd.f32 1.0, %v2310_v58 }
 0x6fb   :  { %v2312_v51 = vpop.eup %2311 }
 0x6fc   :  { %2313 = vrcp.f32 %v1557_v30  ;;  %v1564_v13 = vadd.f32 1.0, %v2312_v51 }
 0x709   :  { %v2314_v49 = vpop.eup %2313 }
 0x70a   :  { %v1567_v60 = vmul.f32 %v2314_v49, %v1550_v59 }
 0x70c   :  { %v1568_v61 = vadd.f32 %v1567_v60, %v3543_v11 }
 0x70e   :  { %2315 = vtanh.f32 %v1568_v61 }
 0x70f   :  { %2317 = vrcp.f32 %v1564_v13 }
 0x71b   :  { %v2316_v62 = vpop.eup %2315 }
 0x71c   :  { %v1570_v15 = vsub.f32 %v3346_v54, %v2316_v62  ;;  %v2318_v63 = vpop.eup %2317 }
 0x71e   :  { %v1571_v18 = vmul.f32 %v2318_v63, %v1570_v15 }
 0x720   :  { %v1572_v1 = vadd.f32 %v2316_v62, %v1571_v18 }
 0x722   :  { %1644 = vmatmul.mubr.f32.vlgmr.msra.gmra.mxu0 %v1572_v1  ;;  %2241 = vmatmul.mubr.f32.vlgmr.msra.gmra.mxu1 %v1572_v1 }
 0x7e2   :  { %v1645_v21 = vpop.f32.mrf.mxu0  ;;  %v1716_v2 = vpop.f32.mrf.mxu1 }
 0x7e3   :  { %v1646_v23 = vadd.f32 %v1645_v21, %v3540_v10  ;;  %v1717_v37 = vadd.f32 %v1716_v2, %v2857_v6 }
 0x7e4   :  { %v2242_v43 = vpop.f32.mrf.mxu1  ;;  %v1647_v27 = vpop.f32.mrf.mxu0 }
 0x7e5   :  { %v1720_v12 = vadd.f32 %v1646_v23, %v3544_v5  ;;  %v1648_v28 = vadd.f32 %v1647_v27, %v2844_v7 }
 0x7e7   :  { %v1793_v25 = vmul.f32 -1.442695, %v1720_v12  ;;  %v1727_v31 = vadd.f32 %v1648_v28, %v3545_v29 }
 0x7e9   :  { %2319 = vpow2.f32 %v1793_v25  ;;  %v1794_v33 = vmul.f32 -1.442695, %v1727_v31 }
 0x7eb   :  { %2321 = vpow2.f32 %v1794_v33 }
 0x7f6   :  { %v2320_v34 = vpop.eup %2319 }
 0x7f7   :  { %v1724_v16 = vadd.f32 1.0, %v2320_v34 }
 0x7f8   :  { %v2322_v35 = vpop.eup %2321 }
 0x7f9   :  { %2323 = vrcp.f32 %v1724_v16  ;;  %v1731_v38 = vadd.f32 1.0, %v2322_v35 }
 0x806   :  { %v2324_v39 = vpop.eup %2323 }
 0x807   :  { %v1734_v40 = vmul.f32 %v2324_v39, %v1717_v37 }
 0x809   :  { %v1735_v19 = vadd.f32 %v1734_v40, %v3546_v42 }
 0x80b   :  { %2325 = vtanh.f32 %v1735_v19 }
 0x80c   :  { %2327 = vrcp.f32 %v1731_v38 }
 0x818   :  { %v2326_v17 = vpop.eup %2325 }
 0x819   :  { %v1737_v41 = vsub.f32 %v1572_v1, %v2326_v17  ;;  %v2328_v7 = vpop.eup %2327 }
 0x81b   :  { %v1738_v45 = vmul.f32 %v2328_v7, %v1737_v41 }
 0x81d   :  { %v1739_v44 = vadd.f32 %v2326_v17, %v1738_v45 }
 0x81f   :  { %1740 = vst [vmem:[#allocation6] sm:$0xff] %v1739_v44 }
 0x820   :  { %2408 = shalt.err (!%p2405_p9)
}
 0x821   :  { %1750 = dma.vmem_to_hbm [thread:$0]  %s1748_s14, 128, %s3436_s5, [#allocation5]  }
 0x822   :  { %2419 = dma.done.wait [#allocation5], 128  }
 0x823   :  { %2420 = vsyncadd [#allocation5], 4294967168 }
 0x824   :  { %1754 = vsyncpa [#allocation4], 1 }
 0x825   :  { %1755 = vsyncpa [#allocation5], 1 }

</bundles_post_ra>
